<compile_context>
chip_gen: v6e
topology: v6e:2x2x1
jax: 0.10.0
libtpu: 0.0.40
codegen_flags: <defaults>
</compile_context>

<pallas_src>
import math

import jax
import jax.numpy as jnp
from jax.experimental import pallas as pl
from jax.experimental.pallas import tpu as pltpu

d_k = d_v = 32
d_model = 116
n_heads = 4
d_ff = 116
LN_EPS = 1e-5  # PyTorch nn.LayerNorm default

_LANE = 128
D_PAD = ((d_model + _LANE - 1) // _LANE) * _LANE  # 128
F_PAD = ((d_ff + _LANE - 1) // _LANE) * _LANE     # 128

_TARGET_ROWS = 1024       # MXU-efficient rows per grid step (review: 256-1024)
_VMEM_BUDGET = 40 << 20   # per-step budget, conservative for v7x's 64 MiB VMEM


# --------------------------------------------------------------------------------------
# Kernel
# --------------------------------------------------------------------------------------
def encoder_layer_kernel(
    x_ref,
    wqkv_ref, bqkv_ref,
    wo_ref, bo_ref,
    ln1_w_ref, ln1_b_ref,
    w1_ref, b1_ref,
    w2_ref, b2_ref,
    ln2_w_ref, ln2_b_ref,
    out_ref, attn_ref,
):
    bt, S, Dp = x_ref.shape
    H = n_heads
    M = bt * S
    HK = H * d_k

    # ---- hoisted constants / parameters (loaded & broadcast once) ----
    lane = jax.lax.broadcasted_iota(jnp.int32, (1, Dp), 1)
    feat_mask = (lane < d_model).astype(jnp.float32)  # 1.0 on real features, 0.0 on pad

    bqkv = bqkv_ref[...]
    bo = bo_ref[...]
    ln1_w, ln1_b = ln1_w_ref[...], ln1_b_ref[...]
    b1, b2 = b1_ref[...], b2_ref[...]
    ln2_w, ln2_b = ln2_w_ref[...], ln2_b_ref[...]
    wo = wo_ref[...]                                   # (H*d_v, D_PAD), bf16

    def layer_norm(t, w, b):
        # LayerNorm over the real d_model features; padded lanes are zero and stay zero.
        mean = jnp.sum(t, axis=-1, keepdims=True) * (1.0 / d_model)
        diff = (t - mean) * feat_mask
        var = jnp.sum(diff * diff, axis=-1, keepdims=True) * (1.0 / d_model)
        return diff * jax.lax.rsqrt(var + LN_EPS) * w + b

    # Flatten (bt, S, Dp) -> (bt*S, Dp): every per-position op shares one lane-dense slab.
    x = x_ref[...].reshape(M, Dp).astype(jnp.float32)
    x_bf = x.astype(jnp.bfloat16)

    # ---- fused Q/K/V projection: one (M,128) @ (128,384) MXU matmul ----
    qkv = jnp.dot(x_bf, wqkv_ref[...], preferred_element_type=jnp.float32) + bqkv
    qkv_bf = qkv.astype(jnp.bfloat16)

    scale = 1.0 / math.sqrt(d_k)

    # ---- multi-head attention; head concat folded into the Wo projection ----
    acc = x + bo                       # residual + output-projection bias, accumulated into
    attn_parts = []
    for h in range(H):                 # unrolled at trace time (H = 4)
        q_h = qkv_bf[:, h * d_k:(h + 1) * d_k].reshape(bt, S, d_k)
        k_h = qkv_bf[:, HK + h * d_k:HK + (h + 1) * d_k].reshape(bt, S, d_k)
        v_h = qkv_bf[:, 2 * HK + h * d_v:2 * HK + (h + 1) * d_v].reshape(bt, S, d_v)

        s_h = jnp.einsum("bqd,bkd->bqk", q_h, k_h,
                         preferred_element_type=jnp.float32) * scale
        s_h = s_h - jnp.max(s_h, axis=-1, keepdims=True)
        e_h = jnp.exp(s_h)
        a_h = e_h / jnp.sum(e_h, axis=-1, keepdims=True)   # exact probabilities
        attn_parts.append(a_h.reshape(bt, 1, S * S))

        ctx_h = jnp.einsum("bqk,bkd->bqd", a_h.astype(jnp.bfloat16), v_h,
                           preferred_element_type=jnp.float32)           # (bt, S, d_v)
        acc = acc + jnp.dot(ctx_h.reshape(M, d_v).astype(jnp.bfloat16),
                            wo[h * d_v:(h + 1) * d_v, :],
                            preferred_element_type=jnp.float32)

    # One lane-dense (bt, 1, H*S*S) store of the attention probabilities.
    attn_ref[...] = jnp.concatenate(attn_parts, axis=-1).astype(attn_ref.dtype)

    # ---- residual + LayerNorm 1 ----
    y = layer_norm(acc, ln1_w, ln1_b)

    # ---- position-wise FFN (Conv1d kernel_size=1 == per-position linear) ----
    h1 = jnp.dot(y.astype(jnp.bfloat16), w1_ref[...],
                 preferred_element_type=jnp.float32) + b1
    h1 = jnp.maximum(h1, 0.0)
    h2 = jnp.dot(h1.astype(jnp.bfloat16), w2_ref[...],
                 preferred_element_type=jnp.float32) + b2
    out = layer_norm(h2 + y, ln2_w, ln2_b)

    out_ref[...] = out.reshape(bt, S, Dp).astype(out_ref.dtype)


# --------------------------------------------------------------------------------------
# Tiling heuristics
# --------------------------------------------------------------------------------------
def _step_vmem_bytes(bt, S):
    rows = bt * S
    io = 2 * (2 * rows * D_PAD * 4)                       # x + out blocks, double-buffered f32
    attn = 2 * (bt * n_heads * S * S * 2)                 # attn block, double-buffered bf16
    w_elems = (D_PAD * 3 * n_heads * d_k + n_heads * d_v * D_PAD
               + D_PAD * F_PAD + F_PAD * D_PAD)
    weights = 2 * 2 * w_elems                             # bf16 weights, double-buffered
    live = rows * (3 * n_heads * d_k + 6 * D_PAD) * 4 \
           + bt * n_heads * S * S * 12                    # live intermediates (rough)
    return io + attn + weights + live


def _pick_batch_tile(B, S):
    # Largest divisor of B whose (bt*S) row-slab fits the VMEM budget and (unless a
    # single batch element already exceeds it) stays below _TARGET_ROWS.  Small
    # workloads therefore run as ONE grid step (bt = B): on single-TC chips splitting
    # tiny work only adds the ~0.35us per-step overhead, and on v7x a 2-way split is
    # only worthwhile once there is real work to share between the TensorCores.
    best = 1
    for bt in range(1, B + 1):
        if B % bt:
            continue
        if bt > 1 and bt * S > _TARGET_ROWS:
            continue
        if _step_vmem_bytes(bt, S) > _VMEM_BUDGET:
            continue
        best = bt
    return best


# --------------------------------------------------------------------------------------
# Wrapper
# --------------------------------------------------------------------------------------
def prepare_params(params):
    """One-time pad / fuse / cast of the PyTorch-layout parameters.

    Do this once and reuse the result so the per-call path contains no pad /
    concatenate / convert ops (review item 7).
    """
    f32, bf16 = jnp.float32, jnp.bfloat16

    def pad_to(a, shape):
        return jnp.pad(a, [(0, t - s) for s, t in zip(a.shape, shape)])

    wqkv = jnp.concatenate([params["wq"], params["wk"], params["wv"]], axis=1)
    bqkv = jnp.concatenate([params["bq"], params["bk"], params["bv"]], axis=1)
    return {
        "wqkv": pad_to(wqkv, (D_PAD, 3 * n_heads * d_k)).astype(bf16),
        "bqkv": bqkv.astype(f32),
        "wo": pad_to(params["wo"], (n_heads * d_v, D_PAD)).astype(bf16),
        "bo": pad_to(params["bo"], (1, D_PAD)).astype(f32),
        "ln1_w": pad_to(params["ln1_w"], (1, D_PAD)).astype(f32),
        "ln1_b": pad_to(params["ln1_b"], (1, D_PAD)).astype(f32),
        "w1": pad_to(params["w1"], (D_PAD, F_PAD)).astype(bf16),
        "b1": pad_to(params["b1"], (1, F_PAD)).astype(f32),
        "w2": pad_to(params["w2"], (F_PAD, D_PAD)).astype(bf16),
        "b2": pad_to(params["b2"], (1, D_PAD)).astype(f32),
        "ln2_w": pad_to(params["ln2_w"], (1, D_PAD)).astype(f32),
        "ln2_b": pad_to(params["ln2_b"], (1, D_PAD)).astype(f32),
    }


def encoder_layer(x, prepared):
    """Returns (out_pad, attn).

    out_pad keeps the 128-lane-padded layout (features [:d_model] are real, pad lanes
    are exactly zero) so no extra HBM pass is spent slicing it; attn is (B, H, S, S)
    in bfloat16.
    """
    B, S, D = x.shape
    assert D == d_model
    H = n_heads
    bt = _pick_batch_tile(B, S)

    x_pad = jnp.pad(x.astype(jnp.float32), ((0, 0), (0, 0), (0, D_PAD - d_model)))

    order = ["wqkv", "bqkv", "wo", "bo", "ln1_w", "ln1_b",
             "w1", "b1", "w2", "b2", "ln2_w", "ln2_b"]
    weights = [prepared[k] for k in order]

    def const_spec(a):
        nd = a.ndim
        return pl.BlockSpec(a.shape, lambda b, _nd=nd: (0,) * _nd)

    in_specs = [pl.BlockSpec((bt, S, D_PAD), lambda b: (b, 0, 0))] + \
               [const_spec(a) for a in weights]

    out_shape = (
        jax.ShapeDtypeStruct((B, S, D_PAD), jnp.float32),
        jax.ShapeDtypeStruct((B, 1, H * S * S), jnp.bfloat16),
    )
    out_specs = (
        pl.BlockSpec((bt, S, D_PAD), lambda b: (b, 0, 0)),
        pl.BlockSpec((bt, 1, H * S * S), lambda b: (b, 0, 0)),
    )

    vmem_limit = int(min(max(2 * _step_vmem_bytes(bt, S), 32 << 20), 48 << 20))

    fn = pl.pallas_call(
        encoder_layer_kernel,
        out_shape=out_shape,
        grid_spec=pltpu.PrefetchScalarGridSpec(
            num_scalar_prefetch=0,
            grid=(B // bt,),
            in_specs=in_specs,
            out_specs=out_specs,
        ),
        compiler_params=pltpu.CompilerParams(
            dimension_semantics=("parallel",),
            vmem_limit_bytes=vmem_limit,
        ),
    )
    out_pad, attn_flat = fn(x_pad, *weights)
    attn = attn_flat.reshape(B, H, S, S)
    return out_pad, attn


# --------------------------------------------------------------------------------------
# Synthetic parameters + pure-JAX f32 reference (mirrors the PyTorch module)
# --------------------------------------------------------------------------------------
def init_params(key):
    ks = jax.random.split(key, 12)

    def lin(k, fan_in, fan_out):
        bound = 1.0 / math.sqrt(fan_in)
        return jax.random.uniform(k, (fan_in, fan_out), jnp.float32, -bound, bound)

    def bias(k, fan_in, n):
        bound = 1.0 / math.sqrt(fan_in)
        return jax.random.uniform(k, (1, n), jnp.float32, -bound, bound)

    return {
        "wq": lin(ks[0], d_model, n_heads * d_k), "bq": bias(ks[1], d_model, n_heads * d_k),
        "wk": lin(ks[2], d_model, n_heads * d_k), "bk": bias(ks[3], d_model, n_heads * d_k),
        "wv": lin(ks[4], d_model, n_heads * d_v), "bv": bias(ks[5], d_model, n_heads * d_v),
        "wo": lin(ks[6], n_heads * d_v, d_model), "bo": bias(ks[7], n_heads * d_v, d_model),
        "ln1_w": jnp.ones((1, d_model), jnp.float32),
        "ln1_b": jnp.zeros((1, d_model), jnp.float32),
        "w1": lin(ks[8], d_model, d_ff), "b1": bias(ks[9], d_model, d_ff),
        "w2": lin(ks[10], d_ff, d_model), "b2": bias(ks[11], d_ff, d_model),
        "ln2_w": jnp.ones((1, d_model), jnp.float32),
        "ln2_b": jnp.zeros((1, d_model), jnp.float32),
    }


def _layer_norm_ref(x, w, b):
    mean = jnp.mean(x, axis=-1, keepdims=True)
    var = jnp.mean((x - mean) ** 2, axis=-1, keepdims=True)
    return (x - mean) * jax.lax.rsqrt(var + LN_EPS) * w + b


def encoder_layer_ref(x, params):
    B, S, _ = x.shape
    q = x @ params["wq"] + params["bq"]
    k = x @ params["wk"] + params["bk"]
    v = x @ params["wv"] + params["bv"]

    def split(t, dh):
        return t.reshape(B, S, n_heads, dh).transpose(0, 2, 1, 3)

    qh, kh, vh = split(q, d_k), split(k, d_k), split(v, d_v)
    scores = jnp.einsum("bhqd,bhkd->bhqk", qh, kh) / math.sqrt(d_k)
    attn = jax.nn.softmax(scores, axis=-1)
    ctx = jnp.einsum("bhqk,bhkd->bhqd", attn, vh)
    ctx = ctx.transpose(0, 2, 1, 3).reshape(B, S, n_heads * d_v)
    y = _layer_norm_ref(ctx @ params["wo"] + params["bo"] + x,
                        params["ln1_w"], params["ln1_b"])
    h1 = jax.nn.relu(y @ params["w1"] + params["b1"])
    out = _layer_norm_ref(h1 @ params["w2"] + params["b2"] + y,
                          params["ln2_w"], params["ln2_b"])
    return out, attn


if __name__ == "__main__":
    key = jax.random.PRNGKey(0)
    k_x, k_p = jax.random.split(key)

    B, S = 2, 8
    x = jax.random.normal(k_x, (B, S, d_model), jnp.float32)
    params = init_params(k_p)
    prepared = prepare_params(params)          # one-time weight prep (outside the call path)

    fwd = jax.jit(encoder_layer)
    out_pad, attn = fwd(x, prepared)
    jax.block_until_ready((out_pad, attn))

    assert out_pad.shape == (B, S, D_PAD)
    assert attn.shape == (B, n_heads, S, S)

    enc_out = out_pad[..., :d_model]           # test-only slice; keep padded layout downstream
    attn_f32 = attn.astype(jnp.float32)

    assert bool(jnp.all(jnp.isfinite(enc_out)))
    assert bool(jnp.all(out_pad[..., d_model:] == 0.0))            # pad lanes stay zero
    assert bool(jnp.allclose(jnp.sum(attn_f32, axis=-1), 1.0, atol=1e-2))

    # sanity check against the f32 reference (bf16 matmuls -> loose tolerances)
    ref_out, ref_attn = encoder_layer_ref(x, params)
    rel_err = jnp.linalg.norm(enc_out - ref_out) / jnp.linalg.norm(ref_out)
    assert bool(rel_err < 5e-2)
    assert bool(jnp.max(jnp.abs(attn_f32 - ref_attn)) < 5e-2)

    print("KERNEL_OK")
</pallas_src>

<mosaic_0001>
module attributes {stable_mosaic.version = 11 : i64} {
  func.func @encoder_layer_kernel(%arg0: i32, %arg1: memref<2x8x128xf32, #tpu.memory_space<vmem>>, %arg2: memref<128x384xbf16, #tpu.memory_space<vmem>>, %arg3: memref<1x384xf32, #tpu.memory_space<vmem>>, %arg4: memref<128x128xbf16, #tpu.memory_space<vmem>>, %arg5: memref<1x128xf32, #tpu.memory_space<vmem>>, %arg6: memref<1x128xf32, #tpu.memory_space<vmem>>, %arg7: memref<1x128xf32, #tpu.memory_space<vmem>>, %arg8: memref<128x128xbf16, #tpu.memory_space<vmem>>, %arg9: memref<1x128xf32, #tpu.memory_space<vmem>>, %arg10: memref<128x128xbf16, #tpu.memory_space<vmem>>, %arg11: memref<1x128xf32, #tpu.memory_space<vmem>>, %arg12: memref<1x128xf32, #tpu.memory_space<vmem>>, %arg13: memref<1x128xf32, #tpu.memory_space<vmem>>, %arg14: memref<2x8x128xf32, #tpu.memory_space<vmem>>, %arg15: memref<2x1x256xbf16, #tpu.memory_space<vmem>>) attributes {dimension_semantics = [#tpu.dimension_semantics<parallel>], iteration_bounds = array<i64: 1>, scalar_prefetch = 0 : i64, scratch_operands = 0 : i64, tpu.core_type = #tpu.core_type<tc>, window_params = [{transform_indices = @transform_0, window_bounds = array<i64: 2, 8, 128>}, {pipeline_mode = #tpu.pipeline_mode<synchronous>, transform_indices = @transform_1, window_bounds = array<i64: 128, 384>}, {pipeline_mode = #tpu.pipeline_mode<synchronous>, transform_indices = @transform_2, window_bounds = array<i64: 1, 384>}, {pipeline_mode = #tpu.pipeline_mode<synchronous>, transform_indices = @transform_3, window_bounds = array<i64: 128, 128>}, {pipeline_mode = #tpu.pipeline_mode<synchronous>, transform_indices = @transform_4, window_bounds = array<i64: 1, 128>}, {pipeline_mode = #tpu.pipeline_mode<synchronous>, transform_indices = @transform_5, window_bounds = array<i64: 1, 128>}, {pipeline_mode = #tpu.pipeline_mode<synchronous>, transform_indices = @transform_6, window_bounds = array<i64: 1, 128>}, {pipeline_mode = #tpu.pipeline_mode<synchronous>, transform_indices = @transform_7, window_bounds = array<i64: 128, 128>}, {pipeline_mode = #tpu.pipeline_mode<synchronous>, transform_indices = @transform_8, window_bounds = array<i64: 1, 128>}, {pipeline_mode = #tpu.pipeline_mode<synchronous>, transform_indices = @transform_9, window_bounds = array<i64: 128, 128>}, {pipeline_mode = #tpu.pipeline_mode<synchronous>, transform_indices = @transform_10, window_bounds = array<i64: 1, 128>}, {pipeline_mode = #tpu.pipeline_mode<synchronous>, transform_indices = @transform_11, window_bounds = array<i64: 1, 128>}, {pipeline_mode = #tpu.pipeline_mode<synchronous>, transform_indices = @transform_12, window_bounds = array<i64: 1, 128>}, {transform_indices = @transform_13, window_bounds = array<i64: 2, 8, 128>}, {transform_indices = @transform_14, window_bounds = array<i64: 2, 1, 256>}]} {
    %0 = tpu.iota {dimensions = array<i32: 1>} : vector<1x128xi32>
    %c116_i32 = arith.constant 116 : i32
    %1 = vector.broadcast %c116_i32 : i32 to vector<1x128xi32>
    %2 = arith.cmpi slt, %0, %1 : vector<1x128xi32>
    %3 = arith.extui %2 : vector<1x128xi1> to vector<1x128xi32>
    %4 = arith.sitofp %3 : vector<1x128xi32> to vector<1x128xf32>
    %c0 = arith.constant 0 : index
    %c0_0 = arith.constant 0 : index
    %5 = vector.load %arg3[%c0, %c0_0] : memref<1x384xf32, #tpu.memory_space<vmem>>, vector<1x384xf32>
    %c0_1 = arith.constant 0 : index
    %c0_2 = arith.constant 0 : index
    %6 = vector.load %arg5[%c0_1, %c0_2] : memref<1x128xf32, #tpu.memory_space<vmem>>, vector<1x128xf32>
    %c0_3 = arith.constant 0 : index
    %c0_4 = arith.constant 0 : index
    %7 = vector.load %arg6[%c0_3, %c0_4] : memref<1x128xf32, #tpu.memory_space<vmem>>, vector<1x128xf32>
    %c0_5 = arith.constant 0 : index
    %c0_6 = arith.constant 0 : index
    %8 = vector.load %arg7[%c0_5, %c0_6] : memref<1x128xf32, #tpu.memory_space<vmem>>, vector<1x128xf32>
    %c0_7 = arith.constant 0 : index
    %c0_8 = arith.constant 0 : index
    %9 = vector.load %arg9[%c0_7, %c0_8] : memref<1x128xf32, #tpu.memory_space<vmem>>, vector<1x128xf32>
    %c0_9 = arith.constant 0 : index
    %c0_10 = arith.constant 0 : index
    %10 = vector.load %arg11[%c0_9, %c0_10] : memref<1x128xf32, #tpu.memory_space<vmem>>, vector<1x128xf32>
    %c0_11 = arith.constant 0 : index
    %c0_12 = arith.constant 0 : index
    %11 = vector.load %arg12[%c0_11, %c0_12] : memref<1x128xf32, #tpu.memory_space<vmem>>, vector<1x128xf32>
    %c0_13 = arith.constant 0 : index
    %c0_14 = arith.constant 0 : index
    %12 = vector.load %arg13[%c0_13, %c0_14] : memref<1x128xf32, #tpu.memory_space<vmem>>, vector<1x128xf32>
    %c0_15 = arith.constant 0 : index
    %c0_16 = arith.constant 0 : index
    %13 = vector.load %arg4[%c0_15, %c0_16] : memref<128x128xbf16, #tpu.memory_space<vmem>>, vector<128x128xbf16>
    %c0_17 = arith.constant 0 : index
    %c0_18 = arith.constant 0 : index
    %c0_19 = arith.constant 0 : index
    %14 = vector.load %arg1[%c0_17, %c0_18, %c0_19] : memref<2x8x128xf32, #tpu.memory_space<vmem>>, vector<2x8x128xf32>
    %15 = vector.shape_cast %14 : vector<2x8x128xf32> to vector<16x128xf32>
    %16 = arith.truncf %15 : vector<16x128xf32> to vector<16x128xbf16>
    %c0_20 = arith.constant 0 : index
    %c0_21 = arith.constant 0 : index
    %17 = vector.load %arg2[%c0_20, %c0_21] : memref<128x384xbf16, #tpu.memory_space<vmem>>, vector<128x384xbf16>
    %cst = arith.constant dense<0.000000e+00> : vector<16x384xf32>
    %18 = tpu.matmul %16, %17, %cst {dimension_numbers = #tpu.dot_dimension_numbers<[1], [0], [0], [1], [0, 0, 1, 1], [], []>} : vector<16x128xbf16>, vector<128x384xbf16>, vector<16x384xf32> -> vector<16x384xf32>
    %19 = vector.broadcast %5 : vector<1x384xf32> to vector<16x384xf32>
    %20 = arith.addf %18, %19 : vector<16x384xf32>
    %21 = arith.truncf %20 : vector<16x384xf32> to vector<16x384xbf16>
    %22 = vector.broadcast %6 : vector<1x128xf32> to vector<16x128xf32>
    %23 = arith.addf %15, %22 : vector<16x128xf32>
    %24 = vector.extract_strided_slice %21 {offsets = [0, 0], sizes = [16, 32], strides = [1, 1]} : vector<16x384xbf16> to vector<16x32xbf16>
    %25 = vector.shape_cast %24 : vector<16x32xbf16> to vector<2x8x32xbf16>
    %26 = vector.extract_strided_slice %21 {offsets = [0, 128], sizes = [16, 32], strides = [1, 1]} : vector<16x384xbf16> to vector<16x32xbf16>
    %27 = vector.shape_cast %26 : vector<16x32xbf16> to vector<2x8x32xbf16>
    %28 = vector.extract_strided_slice %21 {offsets = [0, 256], sizes = [16, 32], strides = [1, 1]} : vector<16x384xbf16> to vector<16x32xbf16>
    %29 = vector.shape_cast %28 : vector<16x32xbf16> to vector<2x8x32xbf16>
    "tpu.trace_start"() <{level = 10 : i32, message = "bqd,bkd->bqk"}> : () -> ()
    %cst_22 = arith.constant dense<0.000000e+00> : vector<2x8x8xf32>
    %30 = tpu.matmul %25, %27, %cst_22 {dimension_numbers = #tpu.dot_dimension_numbers<[2], [2], [1], [1], [0, 0, 0, 1, 1, 1], [0], [0]>} : vector<2x8x32xbf16>, vector<2x8x32xbf16>, vector<2x8x8xf32> -> vector<2x8x8xf32>
    "tpu.trace_stop"() : () -> ()
    %cst_23 = arith.constant 0.176776692 : f32
    %31 = vector.broadcast %cst_23 : f32 to vector<2x8x8xf32>
    %32 = arith.mulf %30, %31 : vector<2x8x8xf32>
    %cst_24 = arith.constant dense<0xFF800000> : vector<2x8xf32>
    %33 = vector.multi_reduction <maximumf>, %32, %cst_24 [2] : vector<2x8x8xf32> to vector<2x8xf32>
    %34 = vector.shape_cast %33 : vector<2x8xf32> to vector<2x8x1xf32>
    %35 = vector.broadcast %34 : vector<2x8x1xf32> to vector<2x8x8xf32>
    %36 = arith.subf %32, %35 : vector<2x8x8xf32>
    %37 = math.exp %36 : vector<2x8x8xf32>
    %cst_25 = arith.constant dense<0.000000e+00> : vector<2x8xf32>
    %38 = vector.multi_reduction <add>, %37, %cst_25 [2] : vector<2x8x8xf32> to vector<2x8xf32>
    %39 = vector.shape_cast %38 : vector<2x8xf32> to vector<2x8x1xf32>
    %40 = vector.broadcast %39 : vector<2x8x1xf32> to vector<2x8x8xf32>
    %41 = arith.divf %37, %40 : vector<2x8x8xf32>
    %42 = vector.shape_cast %41 : vector<2x8x8xf32> to vector<2x1x64xf32>
    %43 = arith.truncf %41 : vector<2x8x8xf32> to vector<2x8x8xbf16>
    "tpu.trace_start"() <{level = 10 : i32, message = "bqk,bkd->bqd"}> : () -> ()
    %cst_26 = arith.constant dense<0.000000e+00> : vector<2x8x32xf32>
    %44 = tpu.matmul %43, %29, %cst_26 {dimension_numbers = #tpu.dot_dimension_numbers<[2], [1], [1], [2], [0, 0, 0, 1, 1, 2], [0], [0]>} : vector<2x8x8xbf16>, vector<2x8x32xbf16>, vector<2x8x32xf32> -> vector<2x8x32xf32>
    "tpu.trace_stop"() : () -> ()
    %45 = vector.shape_cast %44 : vector<2x8x32xf32> to vector<16x32xf32>
    %46 = arith.truncf %45 : vector<16x32xf32> to vector<16x32xbf16>
    %47 = vector.extract_strided_slice %13 {offsets = [0, 0], sizes = [32, 128], strides = [1, 1]} : vector<128x128xbf16> to vector<32x128xbf16>
    %cst_27 = arith.constant dense<0.000000e+00> : vector<16x128xf32>
    %48 = tpu.matmul %46, %47, %cst_27 {dimension_numbers = #tpu.dot_dimension_numbers<[1], [0], [0], [1], [0, 0, 1, 1], [], []>} : vector<16x32xbf16>, vector<32x128xbf16>, vector<16x128xf32> -> vector<16x128xf32>
    %49 = arith.addf %23, %48 : vector<16x128xf32>
    %50 = vector.extract_strided_slice %21 {offsets = [0, 32], sizes = [16, 32], strides = [1, 1]} : vector<16x384xbf16> to vector<16x32xbf16>
    %51 = vector.shape_cast %50 : vector<16x32xbf16> to vector<2x8x32xbf16>
    %52 = vector.extract_strided_slice %21 {offsets = [0, 160], sizes = [16, 32], strides = [1, 1]} : vector<16x384xbf16> to vector<16x32xbf16>
    %53 = vector.shape_cast %52 : vector<16x32xbf16> to vector<2x8x32xbf16>
    %54 = vector.extract_strided_slice %21 {offsets = [0, 288], sizes = [16, 32], strides = [1, 1]} : vector<16x384xbf16> to vector<16x32xbf16>
    %55 = vector.shape_cast %54 : vector<16x32xbf16> to vector<2x8x32xbf16>
    "tpu.trace_start"() <{level = 10 : i32, message = "bqd,bkd->bqk"}> : () -> ()
    %cst_28 = arith.constant dense<0.000000e+00> : vector<2x8x8xf32>
    %56 = tpu.matmul %51, %53, %cst_28 {dimension_numbers = #tpu.dot_dimension_numbers<[2], [2], [1], [1], [0, 0, 0, 1, 1, 1], [0], [0]>} : vector<2x8x32xbf16>, vector<2x8x32xbf16>, vector<2x8x8xf32> -> vector<2x8x8xf32>
    "tpu.trace_stop"() : () -> ()
    %cst_29 = arith.constant 0.176776692 : f32
    %57 = vector.broadcast %cst_29 : f32 to vector<2x8x8xf32>
    %58 = arith.mulf %56, %57 : vector<2x8x8xf32>
    %cst_30 = arith.constant dense<0xFF800000> : vector<2x8xf32>
    %59 = vector.multi_reduction <maximumf>, %58, %cst_30 [2] : vector<2x8x8xf32> to vector<2x8xf32>
    %60 = vector.shape_cast %59 : vector<2x8xf32> to vector<2x8x1xf32>
    %61 = vector.broadcast %60 : vector<2x8x1xf32> to vector<2x8x8xf32>
    %62 = arith.subf %58, %61 : vector<2x8x8xf32>
    %63 = math.exp %62 : vector<2x8x8xf32>
    %cst_31 = arith.constant dense<0.000000e+00> : vector<2x8xf32>
    %64 = vector.multi_reduction <add>, %63, %cst_31 [2] : vector<2x8x8xf32> to vector<2x8xf32>
    %65 = vector.shape_cast %64 : vector<2x8xf32> to vector<2x8x1xf32>
    %66 = vector.broadcast %65 : vector<2x8x1xf32> to vector<2x8x8xf32>
    %67 = arith.divf %63, %66 : vector<2x8x8xf32>
    %68 = vector.shape_cast %67 : vector<2x8x8xf32> to vector<2x1x64xf32>
    %69 = arith.truncf %67 : vector<2x8x8xf32> to vector<2x8x8xbf16>
    "tpu.trace_start"() <{level = 10 : i32, message = "bqk,bkd->bqd"}> : () -> ()
    %cst_32 = arith.constant dense<0.000000e+00> : vector<2x8x32xf32>
    %70 = tpu.matmul %69, %55, %cst_32 {dimension_numbers = #tpu.dot_dimension_numbers<[2], [1], [1], [2], [0, 0, 0, 1, 1, 2], [0], [0]>} : vector<2x8x8xbf16>, vector<2x8x32xbf16>, vector<2x8x32xf32> -> vector<2x8x32xf32>
    "tpu.trace_stop"() : () -> ()
    %71 = vector.shape_cast %70 : vector<2x8x32xf32> to vector<16x32xf32>
    %72 = arith.truncf %71 : vector<16x32xf32> to vector<16x32xbf16>
    %73 = vector.extract_strided_slice %13 {offsets = [32, 0], sizes = [32, 128], strides = [1, 1]} : vector<128x128xbf16> to vector<32x128xbf16>
    %cst_33 = arith.constant dense<0.000000e+00> : vector<16x128xf32>
    %74 = tpu.matmul %72, %73, %cst_33 {dimension_numbers = #tpu.dot_dimension_numbers<[1], [0], [0], [1], [0, 0, 1, 1], [], []>} : vector<16x32xbf16>, vector<32x128xbf16>, vector<16x128xf32> -> vector<16x128xf32>
    %75 = arith.addf %49, %74 : vector<16x128xf32>
    %76 = vector.extract_strided_slice %21 {offsets = [0, 64], sizes = [16, 32], strides = [1, 1]} : vector<16x384xbf16> to vector<16x32xbf16>
    %77 = vector.shape_cast %76 : vector<16x32xbf16> to vector<2x8x32xbf16>
    %78 = vector.extract_strided_slice %21 {offsets = [0, 192], sizes = [16, 32], strides = [1, 1]} : vector<16x384xbf16> to vector<16x32xbf16>
    %79 = vector.shape_cast %78 : vector<16x32xbf16> to vector<2x8x32xbf16>
    %80 = vector.extract_strided_slice %21 {offsets = [0, 320], sizes = [16, 32], strides = [1, 1]} : vector<16x384xbf16> to vector<16x32xbf16>
    %81 = vector.shape_cast %80 : vector<16x32xbf16> to vector<2x8x32xbf16>
    "tpu.trace_start"() <{level = 10 : i32, message = "bqd,bkd->bqk"}> : () -> ()
    %cst_34 = arith.constant dense<0.000000e+00> : vector<2x8x8xf32>
    %82 = tpu.matmul %77, %79, %cst_34 {dimension_numbers = #tpu.dot_dimension_numbers<[2], [2], [1], [1], [0, 0, 0, 1, 1, 1], [0], [0]>} : vector<2x8x32xbf16>, vector<2x8x32xbf16>, vector<2x8x8xf32> -> vector<2x8x8xf32>
    "tpu.trace_stop"() : () -> ()
    %cst_35 = arith.constant 0.176776692 : f32
    %83 = vector.broadcast %cst_35 : f32 to vector<2x8x8xf32>
    %84 = arith.mulf %82, %83 : vector<2x8x8xf32>
    %cst_36 = arith.constant dense<0xFF800000> : vector<2x8xf32>
    %85 = vector.multi_reduction <maximumf>, %84, %cst_36 [2] : vector<2x8x8xf32> to vector<2x8xf32>
    %86 = vector.shape_cast %85 : vector<2x8xf32> to vector<2x8x1xf32>
    %87 = vector.broadcast %86 : vector<2x8x1xf32> to vector<2x8x8xf32>
    %88 = arith.subf %84, %87 : vector<2x8x8xf32>
    %89 = math.exp %88 : vector<2x8x8xf32>
    %cst_37 = arith.constant dense<0.000000e+00> : vector<2x8xf32>
    %90 = vector.multi_reduction <add>, %89, %cst_37 [2] : vector<2x8x8xf32> to vector<2x8xf32>
    %91 = vector.shape_cast %90 : vector<2x8xf32> to vector<2x8x1xf32>
    %92 = vector.broadcast %91 : vector<2x8x1xf32> to vector<2x8x8xf32>
    %93 = arith.divf %89, %92 : vector<2x8x8xf32>
    %94 = vector.shape_cast %93 : vector<2x8x8xf32> to vector<2x1x64xf32>
    %95 = arith.truncf %93 : vector<2x8x8xf32> to vector<2x8x8xbf16>
    "tpu.trace_start"() <{level = 10 : i32, message = "bqk,bkd->bqd"}> : () -> ()
    %cst_38 = arith.constant dense<0.000000e+00> : vector<2x8x32xf32>
    %96 = tpu.matmul %95, %81, %cst_38 {dimension_numbers = #tpu.dot_dimension_numbers<[2], [1], [1], [2], [0, 0, 0, 1, 1, 2], [0], [0]>} : vector<2x8x8xbf16>, vector<2x8x32xbf16>, vector<2x8x32xf32> -> vector<2x8x32xf32>
    "tpu.trace_stop"() : () -> ()
    %97 = vector.shape_cast %96 : vector<2x8x32xf32> to vector<16x32xf32>
    %98 = arith.truncf %97 : vector<16x32xf32> to vector<16x32xbf16>
    %99 = vector.extract_strided_slice %13 {offsets = [64, 0], sizes = [32, 128], strides = [1, 1]} : vector<128x128xbf16> to vector<32x128xbf16>
    %cst_39 = arith.constant dense<0.000000e+00> : vector<16x128xf32>
    %100 = tpu.matmul %98, %99, %cst_39 {dimension_numbers = #tpu.dot_dimension_numbers<[1], [0], [0], [1], [0, 0, 1, 1], [], []>} : vector<16x32xbf16>, vector<32x128xbf16>, vector<16x128xf32> -> vector<16x128xf32>
    %101 = arith.addf %75, %100 : vector<16x128xf32>
    %102 = vector.extract_strided_slice %21 {offsets = [0, 96], sizes = [16, 32], strides = [1, 1]} : vector<16x384xbf16> to vector<16x32xbf16>
    %103 = vector.shape_cast %102 : vector<16x32xbf16> to vector<2x8x32xbf16>
    %104 = vector.extract_strided_slice %21 {offsets = [0, 224], sizes = [16, 32], strides = [1, 1]} : vector<16x384xbf16> to vector<16x32xbf16>
    %105 = vector.shape_cast %104 : vector<16x32xbf16> to vector<2x8x32xbf16>
    %106 = vector.extract_strided_slice %21 {offsets = [0, 352], sizes = [16, 32], strides = [1, 1]} : vector<16x384xbf16> to vector<16x32xbf16>
    %107 = vector.shape_cast %106 : vector<16x32xbf16> to vector<2x8x32xbf16>
    "tpu.trace_start"() <{level = 10 : i32, message = "bqd,bkd->bqk"}> : () -> ()
    %cst_40 = arith.constant dense<0.000000e+00> : vector<2x8x8xf32>
    %108 = tpu.matmul %103, %105, %cst_40 {dimension_numbers = #tpu.dot_dimension_numbers<[2], [2], [1], [1], [0, 0, 0, 1, 1, 1], [0], [0]>} : vector<2x8x32xbf16>, vector<2x8x32xbf16>, vector<2x8x8xf32> -> vector<2x8x8xf32>
    "tpu.trace_stop"() : () -> ()
    %cst_41 = arith.constant 0.176776692 : f32
    %109 = vector.broadcast %cst_41 : f32 to vector<2x8x8xf32>
    %110 = arith.mulf %108, %109 : vector<2x8x8xf32>
    %cst_42 = arith.constant dense<0xFF800000> : vector<2x8xf32>
    %111 = vector.multi_reduction <maximumf>, %110, %cst_42 [2] : vector<2x8x8xf32> to vector<2x8xf32>
    %112 = vector.shape_cast %111 : vector<2x8xf32> to vector<2x8x1xf32>
    %113 = vector.broadcast %112 : vector<2x8x1xf32> to vector<2x8x8xf32>
    %114 = arith.subf %110, %113 : vector<2x8x8xf32>
    %115 = math.exp %114 : vector<2x8x8xf32>
    %cst_43 = arith.constant dense<0.000000e+00> : vector<2x8xf32>
    %116 = vector.multi_reduction <add>, %115, %cst_43 [2] : vector<2x8x8xf32> to vector<2x8xf32>
    %117 = vector.shape_cast %116 : vector<2x8xf32> to vector<2x8x1xf32>
    %118 = vector.broadcast %117 : vector<2x8x1xf32> to vector<2x8x8xf32>
    %119 = arith.divf %115, %118 : vector<2x8x8xf32>
    %120 = vector.shape_cast %119 : vector<2x8x8xf32> to vector<2x1x64xf32>
    %121 = arith.truncf %119 : vector<2x8x8xf32> to vector<2x8x8xbf16>
    "tpu.trace_start"() <{level = 10 : i32, message = "bqk,bkd->bqd"}> : () -> ()
    %cst_44 = arith.constant dense<0.000000e+00> : vector<2x8x32xf32>
    %122 = tpu.matmul %121, %107, %cst_44 {dimension_numbers = #tpu.dot_dimension_numbers<[2], [1], [1], [2], [0, 0, 0, 1, 1, 2], [0], [0]>} : vector<2x8x8xbf16>, vector<2x8x32xbf16>, vector<2x8x32xf32> -> vector<2x8x32xf32>
    "tpu.trace_stop"() : () -> ()
    %123 = vector.shape_cast %122 : vector<2x8x32xf32> to vector<16x32xf32>
    %124 = arith.truncf %123 : vector<16x32xf32> to vector<16x32xbf16>
    %125 = vector.extract_strided_slice %13 {offsets = [96, 0], sizes = [32, 128], strides = [1, 1]} : vector<128x128xbf16> to vector<32x128xbf16>
    %cst_45 = arith.constant dense<0.000000e+00> : vector<16x128xf32>
    %126 = tpu.matmul %124, %125, %cst_45 {dimension_numbers = #tpu.dot_dimension_numbers<[1], [0], [0], [1], [0, 0, 1, 1], [], []>} : vector<16x32xbf16>, vector<32x128xbf16>, vector<16x128xf32> -> vector<16x128xf32>
    %127 = arith.addf %101, %126 : vector<16x128xf32>
    %128 = tpu.concatenate %42, %68, %94, %120 in 2 : vector<2x1x64xf32>, vector<2x1x64xf32>, vector<2x1x64xf32>, vector<2x1x64xf32> -> vector<2x1x256xf32>
    %129 = arith.truncf %128 : vector<2x1x256xf32> to vector<2x1x256xbf16>
    %c0_46 = arith.constant 0 : index
    %c0_47 = arith.constant 0 : index
    %c0_48 = arith.constant 0 : index
    %130 = vector.load %arg15[%c0_46, %c0_47, %c0_48] : memref<2x1x256xbf16, #tpu.memory_space<vmem>>, vector<2x1x256xbf16>
    tpu.vector_store %arg15[%c0_46, %c0_47, %c0_48], %129 {strides = array<i32>} : memref<2x1x256xbf16, #tpu.memory_space<vmem>>, vector<2x1x256xbf16>,
    %cst_49 = arith.constant dense<0.000000e+00> : vector<16xf32>
    %131 = vector.multi_reduction <add>, %127, %cst_49 [1] : vector<16x128xf32> to vector<16xf32>
    %132 = vector.shape_cast %131 : vector<16xf32> to vector<16x1xf32>
    %cst_50 = arith.constant 8.620690e-03 : f32
    %133 = vector.broadcast %cst_50 : f32 to vector<16x1xf32>
    %134 = arith.mulf %132, %133 : vector<16x1xf32>
    %135 = vector.broadcast %134 : vector<16x1xf32> to vector<16x128xf32>
    %136 = arith.subf %127, %135 : vector<16x128xf32>
    %137 = vector.broadcast %4 : vector<1x128xf32> to vector<16x128xf32>
    %138 = arith.mulf %136, %137 : vector<16x128xf32>
    %139 = arith.mulf %138, %138 : vector<16x128xf32>
    %cst_51 = arith.constant dense<0.000000e+00> : vector<16xf32>
    %140 = vector.multi_reduction <add>, %139, %cst_51 [1] : vector<16x128xf32> to vector<16xf32>
    %141 = vector.shape_cast %140 : vector<16xf32> to vector<16x1xf32>
    %cst_52 = arith.constant 8.620690e-03 : f32
    %142 = vector.broadcast %cst_52 : f32 to vector<16x1xf32>
    %143 = arith.mulf %141, %142 : vector<16x1xf32>
    %cst_53 = arith.constant 9.99999974E-6 : f32
    %144 = vector.broadcast %cst_53 : f32 to vector<16x1xf32>
    %145 = arith.addf %143, %144 : vector<16x1xf32>
    %146 = math.rsqrt %145 : vector<16x1xf32>
    %147 = vector.broadcast %146 : vector<16x1xf32> to vector<16x128xf32>
    %148 = arith.mulf %138, %147 : vector<16x128xf32>
    %149 = vector.broadcast %7 : vector<1x128xf32> to vector<16x128xf32>
    %150 = arith.mulf %148, %149 : vector<16x128xf32>
    %151 = vector.broadcast %8 : vector<1x128xf32> to vector<16x128xf32>
    %152 = arith.addf %150, %151 : vector<16x128xf32>
    %153 = arith.truncf %152 : vector<16x128xf32> to vector<16x128xbf16>
    %c0_54 = arith.constant 0 : index
    %c0_55 = arith.constant 0 : index
    %154 = vector.load %arg8[%c0_54, %c0_55] : memref<128x128xbf16, #tpu.memory_space<vmem>>, vector<128x128xbf16>
    %cst_56 = arith.constant dense<0.000000e+00> : vector<16x128xf32>
    %155 = tpu.matmul %153, %154, %cst_56 {dimension_numbers = #tpu.dot_dimension_numbers<[1], [0], [0], [1], [0, 0, 1, 1], [], []>} : vector<16x128xbf16>, vector<128x128xbf16>, vector<16x128xf32> -> vector<16x128xf32>
    %156 = vector.broadcast %9 : vector<1x128xf32> to vector<16x128xf32>
    %157 = arith.addf %155, %156 : vector<16x128xf32>
    %cst_57 = arith.constant 0.000000e+00 : f32
    %158 = vector.broadcast %cst_57 : f32 to vector<16x128xf32>
    %159 = arith.maximumf %157, %158 : vector<16x128xf32>
    %160 = arith.truncf %159 : vector<16x128xf32> to vector<16x128xbf16>
    %c0_58 = arith.constant 0 : index
    %c0_59 = arith.constant 0 : index
    %161 = vector.load %arg10[%c0_58, %c0_59] : memref<128x128xbf16, #tpu.memory_space<vmem>>, vector<128x128xbf16>
    %cst_60 = arith.constant dense<0.000000e+00> : vector<16x128xf32>
    %162 = tpu.matmul %160, %161, %cst_60 {dimension_numbers = #tpu.dot_dimension_numbers<[1], [0], [0], [1], [0, 0, 1, 1], [], []>} : vector<16x128xbf16>, vector<128x128xbf16>, vector<16x128xf32> -> vector<16x128xf32>
    %163 = vector.broadcast %10 : vector<1x128xf32> to vector<16x128xf32>
    %164 = arith.addf %162, %163 : vector<16x128xf32>
    %165 = arith.addf %164, %152 : vector<16x128xf32>
    %cst_61 = arith.constant dense<0.000000e+00> : vector<16xf32>
    %166 = vector.multi_reduction <add>, %165, %cst_61 [1] : vector<16x128xf32> to vector<16xf32>
    %167 = vector.shape_cast %166 : vector<16xf32> to vector<16x1xf32>
    %cst_62 = arith.constant 8.620690e-03 : f32
    %168 = vector.broadcast %cst_62 : f32 to vector<16x1xf32>
    %169 = arith.mulf %167, %168 : vector<16x1xf32>
    %170 = vector.broadcast %169 : vector<16x1xf32> to vector<16x128xf32>
    %171 = arith.subf %165, %170 : vector<16x128xf32>
    %172 = vector.broadcast %4 : vector<1x128xf32> to vector<16x128xf32>
    %173 = arith.mulf %171, %172 : vector<16x128xf32>
    %174 = arith.mulf %173, %173 : vector<16x128xf32>
    %cst_63 = arith.constant dense<0.000000e+00> : vector<16xf32>
    %175 = vector.multi_reduction <add>, %174, %cst_63 [1] : vector<16x128xf32> to vector<16xf32>
    %176 = vector.shape_cast %175 : vector<16xf32> to vector<16x1xf32>
    %cst_64 = arith.constant 8.620690e-03 : f32
    %177 = vector.broadcast %cst_64 : f32 to vector<16x1xf32>
    %178 = arith.mulf %176, %177 : vector<16x1xf32>
    %cst_65 = arith.constant 9.99999974E-6 : f32
    %179 = vector.broadcast %cst_65 : f32 to vector<16x1xf32>
    %180 = arith.addf %178, %179 : vector<16x1xf32>
    %181 = math.rsqrt %180 : vector<16x1xf32>
    %182 = vector.broadcast %181 : vector<16x1xf32> to vector<16x128xf32>
    %183 = arith.mulf %173, %182 : vector<16x128xf32>
    %184 = vector.broadcast %11 : vector<1x128xf32> to vector<16x128xf32>
    %185 = arith.mulf %183, %184 : vector<16x128xf32>
    %186 = vector.broadcast %12 : vector<1x128xf32> to vector<16x128xf32>
    %187 = arith.addf %185, %186 : vector<16x128xf32>
    %188 = vector.shape_cast %187 : vector<16x128xf32> to vector<2x8x128xf32>
    %c0_66 = arith.constant 0 : index
    %c0_67 = arith.constant 0 : index
    %c0_68 = arith.constant 0 : index
    %189 = vector.load %arg14[%c0_66, %c0_67, %c0_68] : memref<2x8x128xf32, #tpu.memory_space<vmem>>, vector<2x8x128xf32>
    tpu.vector_store %arg14[%c0_66, %c0_67, %c0_68], %188 {strides = array<i32>} : memref<2x8x128xf32, #tpu.memory_space<vmem>>, vector<2x8x128xf32>,
    return
  }
  func.func @transform_0(%arg0: i32) -> (i32, i32, i32) {
    %c0_i32 = arith.constant 0 : i32
    %c0_i32_0 = arith.constant 0 : i32
    %c0_i32_1 = arith.constant 0 : i32
    return %arg0, %c0_i32, %c0_i32_0 : i32, i32, i32
  }
  func.func @transform_1(%arg0: i32) -> (i32, i32) {
    %c0_i32 = arith.constant 0 : i32
    %c0_i32_0 = arith.constant 0 : i32
    %c0_i32_1 = arith.constant 0 : i32
    return %c0_i32, %c0_i32_0 : i32, i32
  }
  func.func @transform_2(%arg0: i32) -> (i32, i32) {
    %c0_i32 = arith.constant 0 : i32
    %c0_i32_0 = arith.constant 0 : i32
    %c0_i32_1 = arith.constant 0 : i32
    return %c0_i32, %c0_i32_0 : i32, i32
  }
  func.func @transform_3(%arg0: i32) -> (i32, i32) {
    %c0_i32 = arith.constant 0 : i32
    %c0_i32_0 = arith.constant 0 : i32
    %c0_i32_1 = arith.constant 0 : i32
    return %c0_i32, %c0_i32_0 : i32, i32
  }
  func.func @transform_4(%arg0: i32) -> (i32, i32) {
    %c0_i32 = arith.constant 0 : i32
    %c0_i32_0 = arith.constant 0 : i32
    %c0_i32_1 = arith.constant 0 : i32
    return %c0_i32, %c0_i32_0 : i32, i32
  }
  func.func @transform_5(%arg0: i32) -> (i32, i32) {
    %c0_i32 = arith.constant 0 : i32
    %c0_i32_0 = arith.constant 0 : i32
    %c0_i32_1 = arith.constant 0 : i32
    return %c0_i32, %c0_i32_0 : i32, i32
  }
  func.func @transform_6(%arg0: i32) -> (i32, i32) {
    %c0_i32 = arith.constant 0 : i32
    %c0_i32_0 = arith.constant 0 : i32
    %c0_i32_1 = arith.constant 0 : i32
    return %c0_i32, %c0_i32_0 : i32, i32
  }
  func.func @transform_7(%arg0: i32) -> (i32, i32) {
    %c0_i32 = arith.constant 0 : i32
    %c0_i32_0 = arith.constant 0 : i32
    %c0_i32_1 = arith.constant 0 : i32
    return %c0_i32, %c0_i32_0 : i32, i32
  }
  func.func @transform_8(%arg0: i32) -> (i32, i32) {
    %c0_i32 = arith.constant 0 : i32
    %c0_i32_0 = arith.constant 0 : i32
    %c0_i32_1 = arith.constant 0 : i32
    return %c0_i32, %c0_i32_0 : i32, i32
  }
  func.func @transform_9(%arg0: i32) -> (i32, i32) {
    %c0_i32 = arith.constant 0 : i32
    %c0_i32_0 = arith.constant 0 : i32
    %c0_i32_1 = arith.constant 0 : i32
    return %c0_i32, %c0_i32_0 : i32, i32
  }
  func.func @transform_10(%arg0: i32) -> (i32, i32) {
    %c0_i32 = arith.constant 0 : i32
    %c0_i32_0 = arith.constant 0 : i32
    %c0_i32_1 = arith.constant 0 : i32
    return %c0_i32, %c0_i32_0 : i32, i32
  }
  func.func @transform_11(%arg0: i32) -> (i32, i32) {
    %c0_i32 = arith.constant 0 : i32
    %c0_i32_0 = arith.constant 0 : i32
    %c0_i32_1 = arith.constant 0 : i32
    return %c0_i32, %c0_i32_0 : i32, i32
  }
  func.func @transform_12(%arg0: i32) -> (i32, i32) {
    %c0_i32 = arith.constant 0 : i32
    %c0_i32_0 = arith.constant 0 : i32
    %c0_i32_1 = arith.constant 0 : i32
    return %c0_i32, %c0_i32_0 : i32, i32
  }
  func.func @transform_13(%arg0: i32) -> (i32, i32, i32) {
    %c0_i32 = arith.constant 0 : i32
    %c0_i32_0 = arith.constant 0 : i32
    %c0_i32_1 = arith.constant 0 : i32
    return %arg0, %c0_i32, %c0_i32_0 : i32, i32, i32
  }
  func.func @transform_14(%arg0: i32) -> (i32, i32, i32) {
    %c0_i32 = arith.constant 0 : i32
    %c0_i32_0 = arith.constant 0 : i32
    %c0_i32_1 = arith.constant 0 : i32
    return %arg0, %c0_i32, %c0_i32_0 : i32, i32, i32
  }
}

</mosaic_0001>

<bundles_post_ra>
// kernel: encoder_layer.1
= control target key start
LH: loop header
LB: loop body
LE: loop exit
PB: predicated region body
PF: predicated region fallthrough
CT: control target
= control target key end

     0   :  { %20 = vsyncpa [#allocation3], 0  ;;  %s4327_s0 = inlined_call_operand.vmem [shape: f32[2,8,128], index: 0, kind: input, shape index: {}]   ;;  %s4328_s1 = inlined_call_operand.hbm [shape: bf16[128,384], index: 1, kind: input, shape index: {}]   ;;  %s4329_s2 = inlined_call_operand.vmem [shape: f32[1,384], index: 2, kind: input, shape index: {}]   ;;  %s4330_s3 = inlined_call_operand.hbm [shape: bf16[128,128], index: 3, kind: input, shape index: {}]   ;;  %s4331_s4 = inlined_call_operand.vmem [shape: f32[1,128], index: 4, kind: input, shape index: {}]   ;;  %s4332_s5 = inlined_call_operand.vmem [shape: f32[1,128], index: 5, kind: input, shape index: {}]   ;;  %s4333_s6 = inlined_call_operand.vmem [shape: f32[1,128], index: 6, kind: input, shape index: {}]   ;;  %s4334_s7 = inlined_call_operand.hbm [shape: bf16[128,128], index: 7, kind: input, shape index: {}]   ;;  %s4335_s8 = inlined_call_operand.vmem [shape: f32[1,128], index: 8, kind: input, shape index: {}]   ;;  %s4336_s9 = inlined_call_operand.hbm [shape: bf16[128,128], index: 9, kind: input, shape index: {}]   ;;  %s4337_s10 = inlined_call_operand.vmem [shape: f32[1,128], index: 10, kind: input, shape index: {}]   ;;  %s4338_s11 = inlined_call_operand.vmem [shape: f32[1,128], index: 11, kind: input, shape index: {}]   ;;  %s4339_s12 = inlined_call_operand.vmem [shape: f32[1,128], index: 12, kind: input, shape index: {}]   ;;  %s4340_s13 = inlined_call_operand.hbm [shape: f32[2,8,128], index: 13, kind: output, shape index: {0}]   ;;  %s4341_s14 = inlined_call_operand.vmem [shape: bf16[2,1,256], index: 14, kind: output, shape index: {1}]  }
   0x1   :  { %21 = vsyncpa [#allocation6], 0 }
   0x2   :  { %22 = vsyncpa [#allocation9], 0 }
   0x3   :  { %23 = vsyncpa [#allocation4], 0  ;;  %s3347_s29 = smov [#allocation5]  }
   0x4   :  { %s45_s30 = sshll.u32 %s3347_s29, 4  ;;  %s46_s30 = int_to_ptr.vmem [resolvable:$true] %s45_s30 }
   0x5   :  { %s3247_s15 = scalar_lea.vmem %s46_s30, 1024  ;;  %p3252_p1 = scmp.lt.s32.totalorder %s46_s30, %s46_s30 }
   0x6   :  { %p3248_p0 = scmp.ne.s32.totalorder %s46_s30, %s3247_s15  ;;  %p3253_p2 = scmp.lt.s32.totalorder %s3247_s15, %s3247_s15 }
   0x8   :  { %p3254_p3 = por %p3253_p2, %p3252_p1 }
   0xa   :  { %p3255_p4 = pnand %p3254_p3, %p3248_p0 }
   0xc   :  { %3258 = shalt.err (!%p3255_p4)
}
   0xd   :  { %s3348_s16 = smov 64   ;;  %s3349_s17 = smov 4  }
   0xe   :  { %51 = dma.hbm_to_vmem [thread:$0]  %s4330_s3, 1024, %s46_s30, [#allocation6], %s3348_s16, %s3348_s16, %s3349_s17  }
   0xf   :  { %s3350_s20 = smov [#allocation2]  }
  0x10   :  { %s31_s21 = sshll.u32 %s3350_s20, 4  ;;  %s32_s21 = int_to_ptr.vmem [resolvable:$true] %s31_s21 }
  0x11   :  { %s3267_s22 = scalar_lea.vmem %s32_s21, 3072  ;;  %p3272_p6 = scmp.lt.s32.totalorder %s32_s21, %s32_s21 }
  0x12   :  { %p3268_p5 = scmp.ne.s32.totalorder %s32_s21, %s3267_s22  ;;  %p3273_p7 = scmp.lt.s32.totalorder %s3267_s22, %s3267_s22 }
  0x14   :  { %p3274_p8 = por %p3273_p7, %p3272_p6 }
  0x16   :  { %p3275_p9 = pnand %p3274_p8, %p3268_p5 }
  0x18   :  { %3278 = shalt.err (!%p3275_p9)
}
  0x19   :  { %s3351_s23 = smov 192   ;;  %s3352_s24 = smov 12  }
  0x1a   :  { %37 = dma.hbm_to_vmem [thread:$0]  %s4328_s1, 3072, %s32_s21, [#allocation3], %s3351_s23, %s3351_s23, %s3352_s24  }
  0x1b   :  { %s3353_s27 = smov [#allocation7]   ;;  %s3354_s29 = smov [#allocation8]  }
  0x1c   :  { %s63_s28 = sshll.u32 %s3353_s27, 4  ;;  %s77_s3 = sshll.u32 %s3354_s29, 4  ;;  %s64_s28 = int_to_ptr.vmem [resolvable:$true] %s63_s28  ;;  %s78_s3 = int_to_ptr.vmem [resolvable:$true] %s77_s3 }
  0x1d   :  { %s3287_s30 = scalar_lea.vmem %s64_s28, 1024  ;;  %p3292_p11 = scmp.lt.s32.totalorder %s64_s28, %s64_s28 }
  0x1e   :  { %p3288_p10 = scmp.ne.s32.totalorder %s64_s28, %s3287_s30  ;;  %p3293_p12 = scmp.lt.s32.totalorder %s3287_s30, %s3287_s30 }
  0x20   :  { %p3294_p13 = por %p3293_p12, %p3292_p11 }
  0x22   :  { %p3295_p0 = pnand %p3294_p13, %p3288_p10 }
  0x24   :  { %3298 = shalt.err (!%p3295_p0)
}
  0x25   :  { %69 = dma.hbm_to_vmem [thread:$0]  %s4334_s7, 1024, %s64_s28, [#allocation6], %s3348_s16, %s3348_s16, %s3349_s17  }
  0x26   :  { %s3307_s1 = scalar_lea.vmem %s78_s3, 1024  ;;  %p3312_p2 = scmp.lt.s32.totalorder %s78_s3, %s78_s3 }
  0x27   :  { %p3308_p1 = scmp.ne.s32.totalorder %s78_s3, %s3307_s1  ;;  %p3313_p3 = scmp.lt.s32.totalorder %s3307_s1, %s3307_s1 }
  0x29   :  { %p3314_p4 = por %p3313_p3, %p3312_p2 }
  0x2b   :  { %p3315_p5 = pnand %p3314_p4, %p3308_p1 }
  0x2d   :  { %3318 = shalt.err (!%p3315_p5)
}
  0x2e   :  { %83 = dma.hbm_to_vmem [thread:$0]  %s4336_s9, 1024, %s78_s3, [#allocation9], %s3348_s16, %s3348_s16, %s3349_s17  }
  0x2f   :  { %3339 = dma.done.wait [#allocation3], 3072  }
  0x30   :  { %3340 = vsyncadd [#allocation3], 4294964224 }
  0x31   :  { %3341 = dma.done.wait [#allocation6], 2048  }
  0x32   :  { %3342 = vsyncadd [#allocation6], 4294965248 }
  0x33   :  { %3343 = dma.done.wait [#allocation9], 1024  }
  0x34   :  { %3344 = vsyncadd [#allocation9], 4294966272  ;;  %v3355_v0 = vmov 0   ;;  %v4343_v1 = vmov 0.0   ;;  %v3143_v2 = vld [vmem:[#allocation2 + $0xac] ss:$12 sps:$4 sm:$0xff]   ;;  %v4342_v29 = vlaneseq }
  0x35   :  { %343 = vmatprep.mubr.bf16.mxu0 %v3355_v0  ;;  %2781 = vmatprep.subr.bf16.mxu1 %v4343_v1  ;;  %v3145_v3 = vld [vmem:[#allocation2 + $0xa8] ss:$12 sps:$4 sm:$0xff]   ;;  %v3148_v5 = vld [vmem:[#allocation2 + $0x90] ss:$12 sps:$4 sm:$0xff]   ;;  %v3151_v7 = vld [vmem:[#allocation2 + $0x78] ss:$12 sps:$4 sm:$0xff]  }
  0x36   :  { %311 = vmatprep.subr.bf16.mxu0 %v3143_v2  ;;  %v3146_v4 = vld [vmem:[#allocation2 + $0x94] ss:$12 sps:$4 sm:$0xff]   ;;  %v3149_v6 = vld [vmem:[#allocation2 + $0x7c] ss:$12 sps:$4 sm:$0xff]   ;;  %v3152_v8 = vld [vmem:[#allocation2 + $0x64] ss:$12 sps:$4 sm:$0xff]  }
  0x37   :  { %312 = vmatpush1.bf16.msra.mxu0 %v3145_v3  ;;  %v3154_v9 = vld [vmem:[#allocation2 + $0x60] ss:$12 sps:$4 sm:$0xff]   ;;  %v3167_v11 = vld [vmem:[#allocation2 + $0xb0] ss:$12 sps:$4 sm:$0xff]   ;;  %v3168_v12 = vld [vmem:[#allocation2 + $0x98] ss:$12 sps:$4 sm:$0xff]  }
  0x38   :  { %313 = vmatprep.subr.bf16.mxu0 %v3146_v4  ;;  %v3155_v10 = vld [vmem:[#allocation2 + $0x4c] ss:$12 sps:$4 sm:$0xff]   ;;  %2782 = vmatpush3.bf16.msra.mxu1 %v3167_v11  ;;  %v3157_v13 = vld [vmem:[#allocation2 + $0x48] ss:$12 sps:$4 sm:$0xff]   ;;  %v3160_v15 = vld [vmem:[#allocation2 + $0x30] ss:$12 sps:$4 sm:$0xff]  }
  0x39   :  { %2783 = vmatprep.subr.bf16.mxu1 %v4343_v1  ;;  %v3158_v14 = vld [vmem:[#allocation2 + $0x34] ss:$12 sps:$4 sm:$0xff]   ;;  %v3161_v16 = vld [vmem:[#allocation2 + $0x1c] ss:$12 sps:$4 sm:$0xff]   ;;  %v3163_v19 = vld [vmem:[#allocation2 + $0x18] ss:$12 sps:$4 sm:$0xff]  }
  0x3a   :  { %v3169_v17 = vld [vmem:[#allocation2 + $0x80] ss:$12 sps:$4 sm:$0xff]   ;;  %v3170_v18 = vld [vmem:[#allocation2 + $0x68] ss:$12 sps:$4 sm:$0xff]   ;;  %v3164_v20 = vld [vmem:[#allocation2 + $0x4] ss:$12 sps:$4 sm:$0xff]  }
  0x3b   :  { %314 = vmatpush1.bf16.msra.mxu0 %v3148_v5  ;;  %v3171_v21 = vld [vmem:[#allocation2 + $0x50] ss:$12 sps:$4 sm:$0xff]   ;;  %v3166_v22 = vld [vmem:[#allocation2] ss:$12 sps:$4 sm:$0xff]   ;;  %v3172_v25 = vld [vmem:[#allocation2 + $0x38] ss:$12 sps:$4 sm:$0xff]  }
  0x3c   :  { %315 = vmatprep.subr.bf16.mxu0 %v3149_v6  ;;  %2784 = vmatpush3.bf16.msra.mxu1 %v3168_v12  ;;  %v3474_v23 = vld [vmem:[%s4327_s0] sm:$0xff]  ;;  %v3479_v24 = vld [vmem:[%s4327_s0 + $0x8] sm:$0xff]  ;;  %vm3357_vm0 = vmmov 0   ;;  %v3496_v30 = vshrl.u32 %v4342_v29, 7  ;;  %vm421_vm1 = vcmask 261120   ;;  %vm717_vm2 = vcmask 1043456  }
  0x3d   :  { %2785 = vmatprep.subr.bf16.mxu1 %v4343_v1  ;;  %v134_v26 = vpack.c.bf16 %v3479_v24, %v3474_v23  ;;  %v3173_v27 = vld [vmem:[#allocation2 + $0x20] ss:$12 sps:$4 sm:$0xff]   ;;  %v3174_v28 = vld [vmem:[#allocation2 + $0x8] ss:$12 sps:$4 sm:$0xff]   ;;  %2797 = vmatprep.mubr.msk.bf16.mxu1 %vm3357_vm0, %v4343_v1  ;;  %vm516_vm3 = vcmask 64512   ;;  %s3362_s25 = smov 8  }
  0x3e   :  { %4355 = vst [vmem:[#allocation15_spill] sm:$0xff] %v3496_v30  ;;  %v174_v31 = vsub.s32 1, %v3496_v30  ;;  %v108_v32 = vld [vmem:[%s4329_s2] sm:$0x7]  ;;  %v170_v35 = vsub.s32 0, %v3496_v30  ;;  %v178_v50 = vsub.s32 2, %v3496_v30 }
  0x3f   :  { %316 = vmatpush1.bf16.msra.mxu0 %v3151_v7  ;;  %s3358_s2 = smov 96   ;;  %s3363_s26 = smov 16   ;;  %vm695_vm5 = vcmask 130048   ;;  %vm698_vm6 = vcmask 195584   ;;  %vm703_vm7 = vcmask 326656   ;;  %vm706_vm8 = vcmask 392192  }
  0x40   :  { %317 = vmatprep.subr.bf16.mxu0 %v3152_v8  ;;  %2786 = vmatpush3.bf16.msra.mxu1 %v3169_v17  ;;  %v175_v33 = vrot.slane %v108_v32, %v174_v31  ;;  %v171_v39 = vrot.slane %v108_v32, %v170_v35  ;;  %v179_v51 = vrot.slane %v108_v32, %v178_v50  ;;  %v3360_v31 = vmov 1934713408   ;;  %v3175_v35 = vld [vmem:[#allocation5 + $0x8] sm:$0xff]   ;;  %s3364_s27 = smov 24   ;;  %s3365_s28 = smov 40  }
  0x41   :  { %2787 = vmatprep.subr.bf16.mxu1 %v4343_v1  ;;  %v556_v32 = vunpack.c.l.s4 %v3360_v31  ;;  %s3366_s29 = smov 48   ;;  %s3367_s3 = smov 56   ;;  %vm709_vm9 = vcmask 457728   ;;  %vm2229_vm10 = vcmask 523264   ;;  %vm2274_vm11 = vcmask 1040384  }
  0x42   :  { %vm2275_vm12 = vsmask.f32 256  ;;  %vm2277_vm13 = vcmask 1041409   ;;  %vm2278_vm14 = vsmask.f32 1280 }
  0x43   :  { %318 = vmatpush1.bf16.msra.mxu0 %v3154_v9  ;;  %vm4293_vm15 = vmand %vm2274_vm11, %vm2275_vm12 }
  0x44   :  { %319 = vmatprep.subr.bf16.mxu0 %v3155_v10  ;;  %2788 = vmatpush3.bf16.msra.mxu1 %v3170_v18 }
  0x45   :  { %2789 = vmatprep.subr.bf16.mxu1 %v4343_v1 }
  0x47   :  { %320 = vmatpush1.bf16.msra.mxu0 %v3157_v13 }
  0x48   :  { %321 = vmatprep.subr.bf16.mxu0 %v3158_v14  ;;  %2790 = vmatpush3.bf16.msra.mxu1 %v3171_v21 }
  0x49   :  { %2791 = vmatprep.subr.bf16.mxu1 %v4343_v1 }
  0x4b   :  { %322 = vmatpush1.bf16.msra.mxu0 %v3160_v15 }
  0x4c   :  { %323 = vmatprep.subr.bf16.mxu0 %v3161_v16  ;;  %2792 = vmatpush3.bf16.msra.mxu1 %v3172_v25  ;;  %v3359_v25 = vmov 1983009808  }
  0x4d   :  { %2793 = vmatprep.subr.bf16.mxu1 %v4343_v1 }
  0x4f   :  { %324 = vmatpush1.bf16.msra.mxu0 %v3163_v19 }
  0x50   :  { %325 = vmatprep.subr.bf16.mxu0 %v3164_v20  ;;  %2794 = vmatpush3.bf16.msra.mxu1 %v3173_v27 }
  0x51   :  { %2795 = vmatprep.subr.bf16.mxu1 %v4343_v1 }
  0x53   :  { %326 = vmatpush1.bf16.msra.mxu0 %v3166_v22 }
  0x54   :  { %2801 = vmatprep.subr.bf16.mxu0 %v4343_v1  ;;  %2796 = vmatpush3.bf16.msra.mxu1 %v3174_v28 }
  0x55   :  { %2807 = vmatprep.subr.bf16.mxu1 %v4343_v1 }
  0x56   :  { %344 = vmatmul.mubr.bf16.vlgmr.msra.gmra.mxu0 %v134_v26 }
  0x57   :  { %2803 = vmatprep.mubr.msk.bf16.mxu0 %vm3357_vm0, %v4343_v1  ;;  %2798 = vmatmul.mubr.bf16.vlgmr.msra.gmra.mxu1 %v134_v26  ;;  %v541_v26 = vunpack.c.l.s4 %v3359_v25 }
  0x58   :  { %2809 = vmatprep.mubr.msk.bf16.mxu1 %vm3357_vm0, %v4343_v1 }
  0x59   :  { %v542_v27 = vunpack.c.0.s8 %v541_v26 }
  0x5b   :  { %v3549_v28 = vsub.s32 %v542_v27, %v3496_v30 }
 0x116   :  { %v345_v34 = vpop.f32.mrf.mxu0 }
 0x117   :  { %v346_v44 = vadd.f32 %v345_v34, %v171_v39  ;;  %v388_v52 = vpop.f32.mrf.mxu1 }
 0x118   :  { %v347_v36 = vpop.f32.mrf.mxu0  ;;  %v389_v54 = vadd.f32 %v388_v52, %v179_v51 }
 0x119   :  { %v348_v37 = vadd.f32 %v347_v36, %v175_v33  ;;  %v3512_v47 = vpack.c.bf16 %v346_v44, %v346_v44  ;;  %v2799_v53 = vpop.f32.mrf.mxu1  ;;  %v557_v36 = vunpack.c.0.s8 %v556_v32 }
 0x11a   :  { %v349_v38 = vpop.f32.mrf.mxu0  ;;  %v3526_v58 = vpack.c.bf16 %v389_v54, %v389_v54 }
 0x11b   :  { %v3503_v40 = vpack.c.bf16 %v348_v37, %v348_v37  ;;  %v350_v48 = vadd.f32 %v349_v38, %v171_v39  ;;  %v391_v55 = vpop.f32.mrf.mxu1 }
 0x11c   :  { %v351_v41 = vpop.f32.mrf.mxu0  ;;  %v392_v56 = vadd.f32 %v391_v55, %v179_v51  ;;  %v719_v60 = vsel %vm717_vm2, %v3526_v58, 0 }
 0x11d   :  { %v352_v42 = vadd.f32 %v351_v41, %v175_v33  ;;  %v426_v43 = vsel %vm421_vm1, %v3503_v40, 0  ;;  %v3519_v49 = vpack.c.bf16 %v350_v48, %v350_v48  ;;  %v2800_v57 = vpop.f32.mrf.mxu1  ;;  %v3562_v48 = vsub.s32 %v557_v36, %v3496_v30 }
 0x11e   :  { %2802 = vmatpush3.bf16.xpose.msra.mxu0 %v426_v43  ;;  %v3528_v59 = vpack.c.bf16 %v392_v56, %v392_v56 }
 0x11f   :  { %v3507_v45 = vpack.c.bf16 %v352_v42, %v352_v42  ;;  %2813 = vmatprep.subr.bf16.mxu0 %v4343_v1 }
 0x120   :  { %v765_v61 = vsel %vm717_vm2, %v3528_v59, 0 }
 0x121   :  { %v472_v46 = vsel %vm421_vm1, %v3507_v45, 0 }
 0x122   :  { %2808 = vmatpush3.bf16.xpose.msra.mxu1 %v472_v46 }
 0x123   :  { %2819 = vmatprep.subr.bf16.mxu1 %v4343_v1 }
 0x125   :  { %2804 = vmatmul.mubr.msk.bf16.vlgmr.msra.gmra.mxu0 %vm421_vm1, %v3512_v47 }
 0x126   :  { %2815 = vmatprep.mubr.msk.bf16.mxu0 %vm3357_vm0, %v4343_v1  ;;  %2814 = vmatpush3.bf16.msra.mxu0 %v719_v60 }
 0x127   :  { %2825 = vmatprep.subr.bf16.mxu0 %v4343_v1 }
 0x129   :  { %2810 = vmatmul.mubr.msk.bf16.vlgmr.msra.gmra.mxu1 %vm421_vm1, %v3519_v49 }
 0x12a   :  { %2821 = vmatprep.mubr.msk.bf16.mxu1 %vm3357_vm0, %v4343_v1  ;;  %2820 = vmatpush3.bf16.msra.mxu1 %v765_v61 }
 0x12b   :  { %2833 = vmatprep.subr.bf16.mxu1 %v4343_v1 }
 0x1e5   :  { %v462_v62 = vpop.f32.mrf.mxu0 }
 0x1e6   :  { %v514_v63 = vmul.f32 0.17677669, %v462_v62 }
 0x1e7   :  { %v2805_v0 = vpop.f32.mrf.mxu0 }
 0x1e8   :  { %v517_v2 = vsel %vm516_vm3, %v514_v63, -inf }
 0x1e9   :  { %v508_v3 = vpop.f32.mrf.mxu1  ;;  %518 = vmax.xlane.f32.xlu0 %v517_v2  ;;  %v465_v4 = vpop.f32.mrf.mxu0 }
 0x1ea   :  { %v515_v5 = vmul.f32 0.17677669, %v508_v3 }
 0x1eb   :  { %v2806_v6 = vpop.f32.mrf.mxu0  ;;  %v2811_v7 = vpop.f32.mrf.mxu1 }
 0x1ec   :  { %v520_v8 = vsel %vm516_vm3, %v515_v5, -inf }
 0x1ed   :  { %v511_v9 = vpop.f32.mrf.mxu1  ;;  %521 = vmax.xlane.f32.xlu0 %v520_v8 }
 0x1ef   :  { %v2812_v10 = vpop.f32.mrf.mxu1 }
 0x203   :  { %868 = vrot.lane.b32.xlu0 %v3503_v40, %s3358_s2 }
 0x272   :  { %v519_v11 = vpop.xlane.xlu0 %518 }
 0x273   :  { %v523_v12 = vsub.f32 %v514_v63, %v519_v11 }
 0x275   :  { %v525_v13 = vmul.f32 1.442695, %v523_v12 }
 0x276   :  { %v522_v14 = vpop.xlane.xlu0 %521 }
 0x277   :  { %3199 = vpow2.f32 %v525_v13  ;;  %v524_v15 = vsub.f32 %v515_v5, %v522_v14 }
 0x279   :  { %v527_v16 = vmul.f32 1.442695, %v524_v15 }
 0x27a   :  { %v869_v46 = vpop.permute.xlu0 %868 }
 0x27b   :  { %3201 = vpow2.f32 %v527_v16  ;;  %v874_v54 = vsel %vm421_vm1, %v869_v46, 0 }
 0x284   :  { %v3200_v17 = vpop.eup %3199 }
 0x285   :  { %v529_v18 = vsel %vm516_vm3, %v3200_v17, 0.0 }
 0x286   :  { %530 = vadd.xlane.f32.xlu1 %v529_v18 }
 0x288   :  { %v3202_v19 = vpop.eup %3201 }
 0x289   :  { %v532_v20 = vsel %vm516_vm3, %v3202_v19, 0.0 }
 0x28a   :  { %533 = vadd.xlane.f32.xlu1 %v532_v20 }
 0x29b   :  { %918 = vrot.lane.b32.xlu1 %v3507_v45, %s3358_s2 }
 0x29f   :  { %866 = vrot.lane.b32.xlu1 %v3512_v47, %s3358_s2 }
 0x2a3   :  { %916 = vrot.lane.b32.xlu1 %v3519_v49, %s3358_s2 }
 0x30f   :  { %v531_v21 = vpop.xlane.xlu1 %530 }
 0x310   :  { %3203 = vrcp.f32 %v531_v21 }
 0x313   :  { %v534_v22 = vpop.xlane.xlu1 %533 }
 0x314   :  { %3205 = vrcp.f32 %v534_v22 }
 0x317   :  { %v919_v57 = vpop.permute.xlu1 %918 }
 0x318   :  { %v924_v27 = vsel %vm421_vm1, %v919_v57, 0 }
 0x31b   :  { %v867_v11 = vpop.permute.xlu1 %866 }
 0x31d   :  { %v3204_v33 = vpop.eup %3203 }
 0x31e   :  { %v536_v34 = vmul.f32 %v3204_v33, %v3200_v17  ;;  %v3176_v17 = vld [vmem:[#allocation5] sm:$0xff]  }
 0x320   :  { %v712_v37 = vpack.c.bf16 %v536_v34, %v536_v34  ;;  %v3552_v38 = vrot.slane %v536_v34, %v3549_v28  ;;  %v539_v39 = vcombine.high %v536_v34, %v4343_v1 }
 0x321   :  { %v3206_v41 = vpop.eup %3205 }
 0x322   :  { %v538_v42 = vmul.f32 %v3206_v41, %v3202_v19  ;;  %2816 = vmatmul.mubr.msk.bf16.vlgmr.msra.gmra.mxu0 %vm516_vm3, %v712_v37  ;;  %v554_v43 = vcombine.high %v3552_v38, %v4343_v1  ;;  %v553_v44 = vrot.slane %v539_v39, %v3549_v28 }
 0x323   :  { %2826 = vmatpush3.bf16.msra.mxu0 %v3175_v35  ;;  %2829 = vmatprep.mubr.msk.bf16.mxu0 %vm3357_vm0, %v4343_v1  ;;  %v917_v35 = vpop.permute.xlu1 %916 }
 0x324   :  { %v713_v50 = vpack.c.bf16 %v538_v42, %v538_v42  ;;  %2827 = vmatprep.subr.bf16.mxu0 %v4343_v1  ;;  %v3566_v51 = vrot.slane %v538_v42, %v3549_v28  ;;  %v588_v52 = vcombine.high %v538_v42, %v4343_v1  ;;  %v569_v53 = vcombine.high %v553_v44, %v4343_v1 }
 0x325   :  { %v3573_v55 = vrot.slane %v554_v43, %v3562_v48  ;;  %v3580_v60 = vrot.slane %v553_v44, %v3562_v48 }
 0x326   :  { %2822 = vmatmul.mubr.msk.bf16.vlgmr.msra.gmra.mxu1 %vm516_vm3, %v713_v50  ;;  %v603_v56 = vcombine.high %v3566_v51, %v4343_v1  ;;  %v602_v61 = vrot.slane %v588_v52, %v3549_v28  ;;  %v3591_v0 = vrot.slane %v569_v53, %v3562_v48 }
 0x327   :  { %2834 = vmatpush3.bf16.xpose.msra.mxu1 %v874_v54  ;;  %2835 = vmatprep.mubr.msk.bf16.mxu1 %vm3357_vm0, %v4343_v1  ;;  %v3598_v4 = vcombine.high %v3573_v55, %v4343_v1  ;;  %v3608_v7 = vcombine.high %v3580_v60, %v4343_v1 }
 0x328   :  { %2845 = vmatprep.subr.bf16.mxu1 %v4343_v1  ;;  %v3585_v62 = vrot.slane %v603_v56, %v3562_v48  ;;  %v3588_v63 = vrot.slane %v602_v61, %v3562_v48  ;;  %4356 = vst [vmem:[#allocation16_spill] sm:$0xff] %v3591_v0  ;;  %v618_v2 = vcombine.high %v602_v61, %v4343_v1 }
 0x329   :  { %4357 = vst [vmem:[#allocation17_spill] sm:$0xff] %v3608_v7  ;;  %v3625_v14 = vcombine.high %v3591_v0, %v4343_v1  ;;  %2828 = vmatpush3.bf16.msra.mxu0 %v3176_v17 }
 0x32a   :  { %v3602_v5 = vcombine.high %v3585_v62, %v4343_v1  ;;  %v3612_v8 = vcombine.high %v3588_v63, %v4343_v1  ;;  %v3615_v9 = vrot.slane %v618_v2, %v3562_v48  ;;  %2839 = vmatprep.subr.bf16.mxu0 %v4343_v1 }
 0x32b   :  { %4360 = vst [vmem:[#allocation20_spill] sm:$0xff] %v3625_v14  ;;  %v3181_v14 = vld [vmem:[#allocation5 + $0x38] sm:$0xff]  }
 0x32c   :  { %4358 = vst [vmem:[#allocation18_spill] sm:$0xff] %v3612_v8  ;;  %4359 = vst [vmem:[#allocation19_spill] sm:$0xff] %v3615_v9  ;;  %v3629_v15 = vcombine.high %v3615_v9, %v4343_v1 }
 0x32e   :  { %4361 = vst [vmem:[#allocation21_spill] sm:$0xff] %v3629_v15  ;;  %2836 = vmatmul.mubr.msk.bf16.vlgmr.msra.gmra.mxu1 %vm421_vm1, %v867_v11 }
 0x32f   :  { %2847 = vmatprep.mubr.msk.bf16.mxu1 %vm3357_vm0, %v4343_v1 }
 0x3e2   :  { %v755_v18 = vpop.f32.mrf.mxu0 }
 0x3e4   :  { %v2817_v19 = vpop.f32.mrf.mxu0 }
 0x3e6   :  { %v758_v20 = vpop.f32.mrf.mxu0  ;;  %v801_v21 = vpop.f32.mrf.mxu1 }
 0x3e7   :  { %v807_v22 = vpack.c.bf16 %v801_v21, %v755_v18 }
 0x3e8   :  { %v2818_v25 = vpop.f32.mrf.mxu0  ;;  %v2823_v26 = vpop.f32.mrf.mxu1 }
 0x3e9   :  { %2830 = vmatmul.mubr.msk.bf16.vlgmr.msra.gmra.mxu0 %vm421_vm1, %v807_v22 }
 0x3ea   :  { %2840 = vmatpush3.bf16.xpose.msra.mxu0 %v924_v27  ;;  %v804_v31 = vpop.f32.mrf.mxu1  ;;  %2841 = vmatprep.mubr.msk.bf16.mxu0 %vm3357_vm0, %v4343_v1 }
 0x3eb   :  { %2851 = vmatprep.subr.bf16.mxu0 %v4343_v1 }
 0x3ec   :  { %v2824_v32 = vpop.f32.mrf.mxu1 }
 0x3ee   :  { %v910_v33 = vpop.f32.mrf.mxu1 }
 0x3ef   :  { %v966_v34 = vmul.f32 0.17677669, %v910_v33 }
 0x3f0   :  { %v2837_v36 = vpop.f32.mrf.mxu1 }
 0x3f1   :  { %2842 = vmatmul.mubr.msk.bf16.vlgmr.msra.gmra.mxu0 %vm421_vm1, %v917_v35  ;;  %v968_v37 = vsel %vm516_vm3, %v966_v34, -inf }
 0x3f2   :  { %969 = vmax.xlane.f32.xlu0 %v968_v37  ;;  %v913_v39 = vpop.f32.mrf.mxu1  ;;  %2853 = vmatprep.mubr.msk.bf16.mxu0 %vm3357_vm0, %v4343_v1 }
 0x3f4   :  { %v2838_v41 = vpop.f32.mrf.mxu1 }
 0x47b   :  { %v970_v42 = vpop.xlane.xlu0 %969 }
 0x47c   :  { %v974_v43 = vsub.f32 %v966_v34, %v970_v42 }
 0x47e   :  { %v976_v44 = vmul.f32 1.442695, %v974_v43 }
 0x480   :  { %3207 = vpow2.f32 %v976_v44 }
 0x48d   :  { %v3208_v46 = vpop.eup %3207 }
 0x48e   :  { %v980_v50 = vsel %vm516_vm3, %v3208_v46, 0.0 }
 0x48f   :  { %981 = vadd.xlane.f32.xlu0 %v980_v50 }
 0x4a9   :  { %v3647_v52 = vpop.f32.mrf.mxu0 }
 0x4ab   :  { %v2831_v53 = vpop.f32.mrf.mxu0 }
 0x4ad   :  { %v3649_v54 = vpop.f32.mrf.mxu0 }
 0x4af   :  { %v2832_v56 = vpop.f32.mrf.mxu0 }
 0x4b1   :  { %v960_v57 = vpop.f32.mrf.mxu0 }
 0x4b2   :  { %v967_v61 = vmul.f32 0.17677669, %v960_v57 }
 0x4b3   :  { %v2843_v2 = vpop.f32.mrf.mxu0 }
 0x4b4   :  { %v971_v11 = vsel %vm516_vm3, %v967_v61, -inf }
 0x4b5   :  { %972 = vmax.xlane.f32.xlu1 %v971_v11  ;;  %v963_v17 = vpop.f32.mrf.mxu0 }
 0x4b7   :  { %v2844_v18 = vpop.f32.mrf.mxu0 }
 0x4c6   :  { %1208 = vrot.lane.b32.xlu1 %v3528_v59, %s3358_s2 }
 0x4ca   :  { %1317 = vrot.lane.b32.xlu1 %v3503_v40, %s3348_s16 }
 0x4ce   :  { %1367 = vrot.lane.b32.xlu1 %v3507_v45, %s3348_s16 }
 0x4d2   :  { %1365 = vrot.lane.b32.xlu1 %v3519_v49, %s3348_s16 }
 0x518   :  { %v982_v31 = vpop.xlane.xlu0 %981 }
 0x53e   :  { %v973_v19 = vpop.xlane.xlu1 %972 }
 0x53f   :  { %v975_v20 = vsub.f32 %v967_v61, %v973_v19 }
 0x541   :  { %v978_v21 = vmul.f32 1.442695, %v975_v20 }
 0x542   :  { %v1209_v22 = vpop.permute.xlu1 %1208 }
 0x543   :  { %3209 = vpow2.f32 %v978_v21  ;;  %v1214_v25 = vsel %vm717_vm2, %v1209_v22, 0 }
 0x544   :  { %2852 = vmatpush3.bf16.msra.mxu0 %v1214_v25  ;;  %3211 = vrcp.f32 %v982_v31 }
 0x545   :  { %2865 = vmatprep.subr.bf16.mxu0 %v4343_v1 }
 0x546   :  { %v1318_v50 = vpop.permute.xlu1 %1317 }
 0x547   :  { %v1323_v2 = vsel %vm421_vm1, %v1318_v50, 0  ;;  %v3177_v50 = vld [vmem:[#allocation5 + $0x18] sm:$0xff]  }
 0x550   :  { %v3210_v26 = vpop.eup %3209 }
 0x551   :  { %v983_v27 = vsel %vm516_vm3, %v3210_v26, 0.0  ;;  %v3212_v32 = vpop.eup %3211 }
 0x552   :  { %984 = vadd.xlane.f32.xlu0 %v983_v27  ;;  %v987_v34 = vmul.f32 %v3212_v32, %v3208_v46 }
 0x554   :  { %v1158_v37 = vpack.c.bf16 %v987_v34, %v987_v34  ;;  %v990_v39 = vcombine.high %v987_v34, %v4343_v1  ;;  %v3674_v41 = vrot.slane %v987_v34, %v3549_v28 }
 0x556   :  { %v1004_v43 = vrot.slane %v990_v39, %v3549_v28  ;;  %v1005_v46 = vcombine.high %v3674_v41, %v4343_v1 }
 0x558   :  { %v1020_v61 = vcombine.high %v1004_v43, %v4343_v1  ;;  %v3687_v11 = vrot.slane %v1005_v46, %v3562_v48  ;;  %v3695_v19 = vrot.slane %v1004_v43, %v3562_v48 }
 0x55a   :  { %v3706_v25 = vrot.slane %v1020_v61, %v3562_v48  ;;  %v3712_v27 = vcombine.high %v3687_v11, %v4343_v1 }
 0x55c   :  { %v3739_v43 = vcombine.high %v3706_v25, %v4343_v1 }
 0x568   :  { %1160 = vrot.lane.b32.xlu0 %v3526_v58, %s3358_s2 }
 0x56c   :  { %1315 = vrot.lane.b32.xlu0 %v3512_v47, %s3348_s16 }
 0x5db   :  { %v985_v33 = vpop.xlane.xlu0 %984 }
 0x5dc   :  { %3213 = vrcp.f32 %v985_v33  ;;  %v3722_v33 = vcombine.high %v3695_v19, %v4343_v1 }
 0x5df   :  { %v1161_v35 = vpop.permute.xlu0 %1160 }
 0x5e0   :  { %v1166_v36 = vsel %vm717_vm2, %v1161_v35, 0 }
 0x5e1   :  { %2846 = vmatpush3.bf16.msra.mxu1 %v1166_v36 }
 0x5e2   :  { %2857 = vmatprep.subr.bf16.mxu1 %v4343_v1 }
 0x5e4   :  { %2848 = vmatmul.mubr.msk.bf16.vlgmr.msra.gmra.mxu1 %vm516_vm3, %v1158_v37  ;;  %v1316_v37 = vpop.permute.xlu0 %1315 }
 0x5e5   :  { %2861 = vmatprep.mubr.msk.bf16.mxu1 %vm3357_vm0, %v4343_v1  ;;  %2858 = vmatpush3.bf16.msra.mxu1 %v3177_v50 }
 0x5e6   :  { %2859 = vmatprep.subr.bf16.mxu1 %v4343_v1 }
 0x5e9   :  { %v3214_v42 = vpop.eup %3213 }
 0x5ea   :  { %v989_v44 = vmul.f32 %v3214_v42, %v3210_v26 }
 0x5ec   :  { %v1159_v53 = vpack.c.bf16 %v989_v44, %v989_v44  ;;  %v3680_v56 = vrot.slane %v989_v44, %v3549_v28  ;;  %v1039_v57 = vcombine.high %v989_v44, %v4343_v1 }
 0x5ee   :  { %2854 = vmatmul.mubr.msk.bf16.vlgmr.msra.gmra.mxu0 %vm516_vm3, %v1159_v53  ;;  %v1054_v17 = vcombine.high %v3680_v56, %v4343_v1  ;;  %v1053_v18 = vrot.slane %v1039_v57, %v3549_v28  ;;  %v3178_v53 = vld [vmem:[#allocation5 + $0x10] sm:$0xff]  }
 0x5ef   :  { %2866 = vmatpush3.bf16.xpose.msra.mxu0 %v1323_v2  ;;  %2867 = vmatprep.mubr.msk.bf16.mxu0 %vm3357_vm0, %v4343_v1 }
 0x5f0   :  { %2877 = vmatprep.subr.bf16.mxu0 %v4343_v1  ;;  %v3699_v20 = vrot.slane %v1054_v17, %v3562_v48  ;;  %v3702_v21 = vrot.slane %v1053_v18, %v3562_v48  ;;  %v1069_v22 = vcombine.high %v1053_v18, %v4343_v1  ;;  %2860 = vmatpush3.bf16.msra.mxu1 %v3178_v53  ;;  %v1368_v18 = vpop.permute.xlu1 %1367 }
 0x5f1   :  { %2871 = vmatprep.subr.bf16.mxu1 %v4343_v1  ;;  %v1373_v13 = vsel %vm421_vm1, %v1368_v18, 0 }
 0x5f2   :  { %v3716_v31 = vcombine.high %v3699_v20, %v4343_v1  ;;  %v3726_v34 = vcombine.high %v3702_v21, %v4343_v1  ;;  %v3729_v35 = vrot.slane %v1069_v22, %v3562_v48 }
 0x5f4   :  { %v3743_v44 = vcombine.high %v3729_v35, %v4343_v1 }
 0x5f6   :  { %2868 = vmatmul.mubr.msk.bf16.vlgmr.msra.gmra.mxu0 %vm421_vm1, %v1316_v37 }
 0x5f7   :  { %2879 = vmatprep.mubr.msk.bf16.mxu0 %vm3357_vm0, %v4343_v1 }
 0x6a4   :  { %v1202_v57 = vpop.f32.mrf.mxu1 }
 0x6a6   :  { %v2849_v61 = vpop.f32.mrf.mxu1 }
 0x6a8   :  { %v1205_v2 = vpop.f32.mrf.mxu1 }
 0x6a9   :  { %v1366_v2 = vpop.permute.xlu1 %1365 }
 0x6aa   :  { %v2850_v17 = vpop.f32.mrf.mxu1 }
 0x6ae   :  { %v1250_v22 = vpop.f32.mrf.mxu0 }
 0x6af   :  { %v1256_v37 = vpack.c.bf16 %v1250_v22, %v1202_v57 }
 0x6b0   :  { %v2855_v16 = vpop.f32.mrf.mxu0 }
 0x6b1   :  { %2862 = vmatmul.mubr.msk.bf16.vlgmr.msra.gmra.mxu1 %vm421_vm1, %v1256_v37 }
 0x6b2   :  { %2872 = vmatpush3.bf16.xpose.msra.mxu1 %v1373_v13  ;;  %v1253_v50 = vpop.f32.mrf.mxu0  ;;  %2873 = vmatprep.mubr.msk.bf16.mxu1 %vm3357_vm0, %v4343_v1 }
 0x6b3   :  { %2883 = vmatprep.subr.bf16.mxu1 %v4343_v1 }
 0x6b4   :  { %v2856_v53 = vpop.f32.mrf.mxu0 }
 0x6b6   :  { %v1359_v12 = vpop.f32.mrf.mxu0 }
 0x6b7   :  { %v1415_v61 = vmul.f32 0.17677669, %v1359_v12  ;;  %v2645_v12 = vld [vmem:[%s4331_s4] ss:$0 sm:$0xff]  ;;  %s3361_s4 = smov 32  }
 0x6b8   :  { %v2869_v17 = vpop.f32.mrf.mxu0 }
 0x6b9   :  { %2874 = vmatmul.mubr.msk.bf16.vlgmr.msra.gmra.mxu1 %vm421_vm1, %v1366_v2  ;;  %v1417_v16 = vsel %vm516_vm3, %v1415_v61, -inf  ;;  %v404_v2 = vadd.f32 %v2645_v12, %v3474_v23 }
 0x6ba   :  { %1418 = vmax.xlane.f32.xlu0 %v1417_v16  ;;  %v1362_v57 = vpop.f32.mrf.mxu0  ;;  %2885 = vmatprep.mubr.msk.bf16.mxu1 %vm3357_vm0, %v4343_v1  ;;  %v405_v16 = vadd.f32 %v2645_v12, %v3479_v24 }
 0x6bb   :  { %v864_v17 = vadd.f32 %v3647_v52, %v404_v2 }
 0x6bc   :  { %v2870_v13 = vpop.f32.mrf.mxu0 }
 0x743   :  { %v1419_v18 = vpop.xlane.xlu0 %1418 }
 0x744   :  { %v1423_v22 = vsub.f32 %v1415_v61, %v1419_v18  ;;  %v865_v18 = vadd.f32 %v3649_v54, %v405_v16 }
 0x746   :  { %v1425_v37 = vmul.f32 1.442695, %v1423_v22 }
 0x748   :  { %3215 = vpow2.f32 %v1425_v37 }
 0x755   :  { %v3216_v50 = vpop.eup %3215 }
 0x756   :  { %v1429_v53 = vsel %vm516_vm3, %v3216_v50, 0.0 }
 0x757   :  { %1430 = vadd.xlane.f32.xlu0 %v1429_v53 }
 0x771   :  { %v1306_v57 = vpop.f32.mrf.mxu1 }
 0x772   :  { %v3768_v13 = vadd.f32 %v1306_v57, %v864_v17 }
 0x773   :  { %v2863_v61 = vpop.f32.mrf.mxu1 }
 0x775   :  { %v1309_v22 = vpop.f32.mrf.mxu1 }
 0x776   :  { %v3771_v37 = vadd.f32 %v1309_v22, %v865_v18 }
 0x777   :  { %v2864_v53 = vpop.f32.mrf.mxu1 }
 0x779   :  { %v1409_v6 = vpop.f32.mrf.mxu1 }
 0x77a   :  { %v1416_v10 = vmul.f32 0.17677669, %v1409_v6 }
 0x77b   :  { %v2875_v3 = vpop.f32.mrf.mxu1 }
 0x77c   :  { %v1420_v46 = vsel %vm516_vm3, %v1416_v10, -inf }
 0x77d   :  { %1421 = vmax.xlane.f32.xlu1 %v1420_v46  ;;  %v1412_v23 = vpop.f32.mrf.mxu1 }
 0x77f   :  { %v2876_v52 = vpop.f32.mrf.mxu1 }
 0x78e   :  { %1657 = vrot.lane.b32.xlu1 %v3528_v59, %s3348_s16 }
 0x792   :  { %1766 = vrot.lane.b32.xlu1 %v3503_v40, %s3361_s4 }
 0x796   :  { %1816 = vrot.lane.b32.xlu1 %v3507_v45, %s3361_s4 }
 0x79a   :  { %1814 = vrot.lane.b32.xlu1 %v3519_v49, %s3361_s4 }
 0x7e0   :  { %v1431_v40 = vpop.xlane.xlu0 %1430 }
 0x806   :  { %v1422_v24 = vpop.xlane.xlu1 %1421 }
 0x807   :  { %v1424_v3 = vsub.f32 %v1416_v10, %v1422_v24 }
 0x809   :  { %v1427_v6 = vmul.f32 1.442695, %v1424_v3 }
 0x80a   :  { %v1658_v54 = vpop.permute.xlu1 %1657 }
 0x80b   :  { %3217 = vpow2.f32 %v1427_v6  ;;  %v1663_v46 = vsel %vm717_vm2, %v1658_v54, 0 }
 0x80c   :  { %2884 = vmatpush3.bf16.msra.mxu1 %v1663_v46  ;;  %3219 = vrcp.f32 %v1431_v40 }
 0x80d   :  { %2897 = vmatprep.subr.bf16.mxu1 %v4343_v1 }
 0x80e   :  { %v1767_v23 = vpop.permute.xlu1 %1766 }
 0x80f   :  { %v1772_v54 = vsel %vm421_vm1, %v1767_v23, 0 }
 0x812   :  { %v1817_v42 = vpop.permute.xlu1 %1816 }
 0x813   :  { %v1822_v36 = vsel %vm421_vm1, %v1817_v42, 0 }
 0x818   :  { %v3218_v12 = vpop.eup %3217 }
 0x819   :  { %v1432_v2 = vsel %vm516_vm3, %v3218_v12, 0.0  ;;  %v3220_v45 = vpop.eup %3219 }
 0x81a   :  { %1433 = vadd.xlane.f32.xlu0 %v1432_v2  ;;  %v1436_v10 = vmul.f32 %v3220_v45, %v3216_v50 }
 0x81c   :  { %v1607_v57 = vpack.c.bf16 %v1436_v10, %v1436_v10  ;;  %v3796_v61 = vrot.slane %v1436_v10, %v3549_v28 }
 0x81e   :  { %v1454_v53 = vcombine.high %v3796_v61, %v4343_v1 }
 0x820   :  { %v3809_v46 = vrot.slane %v1454_v53, %v3562_v48 }
 0x830   :  { %1609 = vrot.lane.b32.xlu0 %v3526_v58, %s3348_s16 }
 0x834   :  { %1764 = vrot.lane.b32.xlu0 %v3512_v47, %s3361_s4  ;;  %v1439_v47 = vcombine.high %v1436_v10, %v4343_v1 }
 0x836   :  { %v1453_v50 = vrot.slane %v1439_v47, %v3549_v28 }
 0x838   :  { %v1469_v6 = vcombine.high %v1453_v50, %v4343_v1  ;;  %v3817_v40 = vrot.slane %v1453_v50, %v3562_v48 }
 0x83a   :  { %v3844_v50 = vcombine.high %v3817_v40, %v4343_v1 }
 0x8a3   :  { %v1434_v49 = vpop.xlane.xlu0 %1433 }
 0x8a4   :  { %3221 = vrcp.f32 %v1434_v49 }
 0x8a7   :  { %v1610_v17 = vpop.permute.xlu0 %1609 }
 0x8a8   :  { %v1615_v16 = vsel %vm717_vm2, %v1610_v17, 0  ;;  %v3828_v17 = vrot.slane %v1469_v6, %v3562_v48 }
 0x8a9   :  { %2878 = vmatpush3.bf16.msra.mxu0 %v1615_v16 }
 0x8aa   :  { %2889 = vmatprep.subr.bf16.mxu0 %v4343_v1  ;;  %4362 = vst [vmem:[#allocation22_spill] sm:$0xff] %v3828_v17 }
 0x8ac   :  { %2880 = vmatmul.mubr.msk.bf16.vlgmr.msra.gmra.mxu0 %vm516_vm3, %v1607_v57  ;;  %v3834_v57 = vcombine.high %v3809_v46, %v4343_v1 }
 0x8ad   :  { %2893 = vmatprep.mubr.msk.bf16.mxu0 %vm3357_vm0, %v4343_v1 }
 0x8b1   :  { %v3222_v18 = vpop.eup %3221 }
 0x8b2   :  { %v1438_v22 = vmul.f32 %v3222_v18, %v3218_v12 }
 0x8b4   :  { %v1608_v52 = vpack.c.bf16 %v1438_v22, %v1438_v22  ;;  %v3802_v24 = vrot.slane %v1438_v22, %v3549_v28  ;;  %v1488_v3 = vcombine.high %v1438_v22, %v4343_v1 }
 0x8b6   :  { %2886 = vmatmul.mubr.msk.bf16.vlgmr.msra.gmra.mxu1 %vm516_vm3, %v1608_v52  ;;  %v1503_v12 = vcombine.high %v3802_v24, %v4343_v1  ;;  %v1502_v2 = vrot.slane %v1488_v3, %v3549_v28  ;;  %v1765_v52 = vpop.permute.xlu0 %1764  ;;  %v3180_v3 = vld [vmem:[#allocation5 + $0x20] sm:$0xff]  }
 0x8b7   :  { %2898 = vmatpush3.bf16.xpose.msra.mxu1 %v1772_v54  ;;  %2899 = vmatprep.mubr.msk.bf16.mxu1 %vm3357_vm0, %v4343_v1  ;;  %v3861_v54 = vcombine.high %v3828_v17, %v4343_v1 }
 0x8b8   :  { %2909 = vmatprep.subr.bf16.mxu1 %v4343_v1  ;;  %v3821_v45 = vrot.slane %v1503_v12, %v3562_v48  ;;  %v3824_v49 = vrot.slane %v1502_v2, %v3562_v48  ;;  %v1518_v10 = vcombine.high %v1502_v2, %v4343_v1 }
 0x8b9   :  { %4363 = vst [vmem:[#allocation23_spill] sm:$0xff] %v3861_v54 }
 0x8ba   :  { %v3838_v47 = vcombine.high %v3821_v45, %v4343_v1  ;;  %v3848_v22 = vcombine.high %v3824_v49, %v4343_v1  ;;  %v3851_v53 = vrot.slane %v1518_v10, %v3562_v48  ;;  %v3179_v10 = vld [vmem:[#allocation5 + $0x28] sm:$0xff]  }
 0x8bb   :  { %2890 = vmatpush3.bf16.msra.mxu0 %v3179_v10 }
 0x8bc   :  { %v3865_v12 = vcombine.high %v3851_v53, %v4343_v1  ;;  %2891 = vmatprep.subr.bf16.mxu0 %v4343_v1 }
 0x8be   :  { %4364 = vst [vmem:[#allocation24_spill] sm:$0xff] %v3865_v12  ;;  %2900 = vmatmul.mubr.msk.bf16.vlgmr.msra.gmra.mxu1 %vm421_vm1, %v1765_v52 }
 0x8bf   :  { %2911 = vmatprep.mubr.msk.bf16.mxu1 %vm3357_vm0, %v4343_v1  ;;  %2892 = vmatpush3.bf16.msra.mxu0 %v3180_v3 }
 0x8c0   :  { %2903 = vmatprep.subr.bf16.mxu0 %v4343_v1 }
 0x96c   :  { %v1651_v6 = vpop.f32.mrf.mxu0 }
 0x96e   :  { %v2881_v18 = vpop.f32.mrf.mxu0 }
 0x970   :  { %v1654_v23 = vpop.f32.mrf.mxu0 }
 0x971   :  { %v1815_v23 = vpop.permute.xlu1 %1814 }
 0x972   :  { %v2882_v16 = vpop.f32.mrf.mxu0 }
 0x976   :  { %v1699_v52 = vpop.f32.mrf.mxu1 }
 0x977   :  { %v1705_v39 = vpack.c.bf16 %v1699_v52, %v1651_v6 }
 0x978   :  { %v2887_v32 = vpop.f32.mrf.mxu1 }
 0x979   :  { %2894 = vmatmul.mubr.msk.bf16.vlgmr.msra.gmra.mxu0 %vm421_vm1, %v1705_v39 }
 0x97a   :  { %2904 = vmatpush3.bf16.xpose.msra.mxu0 %v1822_v36  ;;  %v1702_v10 = vpop.f32.mrf.mxu1  ;;  %2905 = vmatprep.mubr.msk.bf16.mxu0 %vm3357_vm0, %v4343_v1 }
 0x97b   :  { %2915 = vmatprep.subr.bf16.mxu0 %v4343_v1 }
 0x97c   :  { %v2888_v3 = vpop.f32.mrf.mxu1 }
 0x97e   :  { %v1808_v2 = vpop.f32.mrf.mxu1 }
 0x97f   :  { %v1864_v18 = vmul.f32 0.17677669, %v1808_v2 }
 0x980   :  { %v2901_v16 = vpop.f32.mrf.mxu1 }
 0x981   :  { %2906 = vmatmul.mubr.msk.bf16.vlgmr.msra.gmra.mxu0 %vm421_vm1, %v1815_v23  ;;  %v1866_v32 = vsel %vm516_vm3, %v1864_v18, -inf }
 0x982   :  { %1867 = vmax.xlane.f32.xlu0 %v1866_v32  ;;  %v1811_v42 = vpop.f32.mrf.mxu1  ;;  %2917 = vmatprep.mubr.msk.bf16.mxu0 %vm3357_vm0, %v4343_v1 }
 0x984   :  { %v2902_v36 = vpop.f32.mrf.mxu1 }
 0xa0b   :  { %v1868_v39 = vpop.xlane.xlu0 %1867 }
 0xa0c   :  { %v1872_v6 = vsub.f32 %v1864_v18, %v1868_v39 }
 0xa0e   :  { %v1874_v52 = vmul.f32 1.442695, %v1872_v6 }
 0xa10   :  { %3223 = vpow2.f32 %v1874_v52 }
 0xa1d   :  { %v3224_v10 = vpop.eup %3223 }
 0xa1e   :  { %v1878_v3 = vsel %vm516_vm3, %v3224_v10, 0.0 }
 0xa1f   :  { %1879 = vadd.xlane.f32.xlu0 %v1878_v3 }
 0xa39   :  { %v1755_v2 = vpop.f32.mrf.mxu0 }
 0xa3a   :  { %v3885_v16 = vadd.f32 %v1755_v2, %v3768_v13 }
 0xa3b   :  { %v2895_v23 = vpop.f32.mrf.mxu0 }
 0xa3d   :  { %v1758_v26 = vpop.f32.mrf.mxu0 }
 0xa3e   :  { %v3888_v32 = vadd.f32 %v1758_v26, %v3771_v37  ;;  %v4365_v37 = vmov 0.0  }
 0xa3f   :  { %v2896_v42 = vpop.f32.mrf.mxu0 }
 0xa41   :  { %v1858_v29 = vpop.f32.mrf.mxu0 }
 0xa42   :  { %v1865_v36 = vmul.f32 0.17677669, %v1858_v29 }
 0xa43   :  { %v2907_v1 = vpop.f32.mrf.mxu0 }
 0xa44   :  { %v1869_v18 = vsel %vm516_vm3, %v1865_v36, -inf }
 0xa45   :  { %1870 = vmax.xlane.f32.xlu1 %v1869_v18  ;;  %v1861_v39 = vpop.f32.mrf.mxu0 }
 0xa47   :  { %v2908_v6 = vpop.f32.mrf.mxu0 }
 0xa56   :  { %2106 = vrot.lane.b32.xlu1 %v3528_v59, %s3361_s4 }
 0xaa8   :  { %v1880_v23 = vpop.xlane.xlu0 %1879 }
 0xace   :  { %v1871_v52 = vpop.xlane.xlu1 %1870 }
 0xacf   :  { %v1873_v13 = vsub.f32 %v1865_v36, %v1871_v52 }
 0xad1   :  { %v1876_v3 = vmul.f32 1.442695, %v1873_v13 }
 0xad2   :  { %v2107_v2 = vpop.permute.xlu1 %2106 }
 0xad3   :  { %3225 = vpow2.f32 %v1876_v3  ;;  %v2112_v26 = vsel %vm717_vm2, %v2107_v2, 0 }
 0xad4   :  { %2916 = vmatpush3.bf16.msra.mxu0 %v2112_v26  ;;  %3227 = vrcp.f32 %v1880_v23 }
 0xad5   :  { %2929 = vmatprep.subr.bf16.mxu0 %v4365_v37 }
 0xae0   :  { %v3226_v29 = vpop.eup %3225 }
 0xae1   :  { %v1881_v1 = vsel %vm516_vm3, %v3226_v29, 0.0  ;;  %v3228_v59 = vpop.eup %3227 }
 0xae2   :  { %1882 = vadd.xlane.f32.xlu0 %v1881_v1  ;;  %v1885_v36 = vmul.f32 %v3228_v59, %v3224_v10 }
 0xae4   :  { %v2056_v6 = vpack.c.bf16 %v1885_v36, %v1885_v36  ;;  %v3905_v52 = vrot.slane %v1885_v36, %v3549_v28 }
 0xae6   :  { %v1903_v2 = vcombine.high %v3905_v52, %v4365_v37 }
 0xaf8   :  { %2058 = vrot.lane.b32.xlu0 %v3526_v58, %s3361_s4  ;;  %v1888_v58 = vcombine.high %v1885_v36, %v4365_v37 }
 0xafa   :  { %v1902_v10 = vrot.slane %v1888_v58, %v3549_v28 }
 0xafc   :  { %v1918_v59 = vcombine.high %v1902_v10, %v4365_v37 }
 0xb6b   :  { %v1883_v42 = vpop.xlane.xlu0 %1882 }
 0xb6c   :  { %3229 = vrcp.f32 %v1883_v42  ;;  %v3917_v42 = vrot.slane %v1903_v2, %v3562_v48 }
 0xb6f   :  { %v2059_v18 = vpop.permute.xlu0 %2058 }
 0xb70   :  { %v2064_v39 = vsel %vm717_vm2, %v2059_v18, 0  ;;  %v3923_v18 = vrot.slane %v1902_v10, %v3562_v48  ;;  %v3941_v10 = vcombine.high %v3917_v42, %v4365_v37 }
 0xb71   :  { %2910 = vmatpush3.bf16.msra.mxu1 %v2064_v39 }
 0xb72   :  { %2921 = vmatprep.subr.bf16.mxu1 %v4365_v37 }
 0xb74   :  { %2912 = vmatmul.mubr.msk.bf16.vlgmr.msra.gmra.mxu1 %vm516_vm3, %v2056_v6 }
 0xb75   :  { %2925 = vmatprep.mubr.msk.bf16.mxu1 %vm3357_vm0, %v4365_v37  ;;  %2922 = vmatpush3.bf16.msra.mxu1 %v3181_v14 }
 0xb76   :  { %2923 = vmatprep.subr.bf16.mxu1 %v4365_v37 }
 0xb79   :  { %v3230_v13 = vpop.eup %3229 }
 0xb7a   :  { %v1887_v3 = vmul.f32 %v3230_v13, %v3226_v29  ;;  %v3935_v13 = vrot.slane %v1918_v59, %v3562_v48 }
 0xb7c   :  { %v2057_v26 = vpack.c.bf16 %v1887_v3, %v1887_v3  ;;  %v3911_v1 = vrot.slane %v1887_v3, %v3549_v28  ;;  %v1937_v23 = vcombine.high %v1887_v3, %v4365_v37 }
 0xb7e   :  { %2918 = vmatmul.mubr.msk.bf16.vlgmr.msra.gmra.mxu0 %vm516_vm3, %v2057_v26  ;;  %v1952_v36 = vcombine.high %v3911_v1, %v4365_v37  ;;  %v1951_v29 = vrot.slane %v1937_v23, %v3549_v28  ;;  %v3951_v26 = vcombine.high %v3923_v18, %v4365_v37  ;;  %v3968_v28 = vcombine.high %v3935_v13, %v4365_v37 }
 0xb7f   :  { %2945 = vmatprep.mubr.msk.bf16.mxu0 %vm3357_vm0, %v4365_v37 }
 0xb80   :  { %v3928_v39 = vrot.slane %v1952_v36, %v3562_v48  ;;  %v3931_v6 = vrot.slane %v1951_v29, %v3562_v48  ;;  %v1967_v58 = vcombine.high %v1951_v29, %v4365_v37  ;;  %v3182_v36 = vld [vmem:[#allocation5 + $0x30] sm:$0xff]  }
 0xb81   :  { %2924 = vmatpush3.bf16.msra.mxu1 %v3182_v36 }
 0xb82   :  { %v3945_v3 = vcombine.high %v3928_v39, %v4365_v37  ;;  %v3955_v23 = vcombine.high %v3931_v6, %v4365_v37  ;;  %v3958_v59 = vrot.slane %v1967_v58, %v3562_v48  ;;  %2949 = vmatprep.subr.bf16.mxu1 %v4365_v37 }
 0xb84   :  { %v3972_v30 = vcombine.high %v3958_v59, %v4365_v37 }
 0xc34   :  { %v2100_v2 = vpop.f32.mrf.mxu1 }
 0xc36   :  { %v2913_v29 = vpop.f32.mrf.mxu1 }
 0xc38   :  { %v2103_v15 = vpop.f32.mrf.mxu1 }
 0xc3a   :  { %v2914_v0 = vpop.f32.mrf.mxu1 }
 0xc3b   :  { %v3183_v0 = vld [vmem:[#allocation7 + $0x38] sm:$0xff]  }
 0xc3c   :  { %2930 = vmatpush3.bf16.msra.mxu0 %v3183_v0 }
 0xc3d   :  { %2931 = vmatprep.subr.bf16.mxu0 %v4365_v37 }
 0xc3e   :  { %v2148_v9 = vpop.f32.mrf.mxu0 }
 0xc3f   :  { %v2154_v54 = vpack.c.bf16 %v2148_v9, %v2100_v2  ;;  %v4366_v9 = vlaneseq }
 0xc40   :  { %v2919_v12 = vpop.f32.mrf.mxu0 }
 0xc41   :  { %2926 = vmatmul.mubr.msk.bf16.vlgmr.msra.gmra.mxu1 %vm421_vm1, %v2154_v54 }
 0xc42   :  { %v2151_v7 = vpop.f32.mrf.mxu0  ;;  %2965 = vmatprep.mubr.msk.bf16.mxu1 %vm3357_vm0, %v4365_v37  ;;  %vm2279_vm0 = vmand %vm2277_vm13, %vm2278_vm14 }
 0xc43   :  { %v104_v7 = vand.u32 127, %v4366_v9  ;;  %v4004_v9 = vrot.slane %v3680_v56, %v3562_v48  ;;  %v3185_v56 = vld [vmem:[#allocation7 + $0x28] sm:$0xff]  }
 0xc44   :  { %v2920_v14 = vpop.f32.mrf.mxu0 }
 0xc45   :  { %vm105_vm4 = vcmp.lt.s32.totalorder %v104_v7, 116  ;;  %v4008_v7 = vrot.slane %v3905_v52, %v3562_v48 }
 0xc46   :  { %v3986_v2 = vsel %vm105_vm4, 1.0, %v4365_v37 }
 0xd01   :  { %v2204_v58 = vpop.f32.mrf.mxu1 }
 0xd02   :  { %v2211_v8 = vadd.f32 %v2204_v58, %v3885_v16 }
 0xd03   :  { %v2927_v36 = vpop.f32.mrf.mxu1 }
 0xd04   :  { %2287 = vadd.xlane.f32.xlu1 %v2211_v8 }
 0xd05   :  { %v2207_v17 = vpop.f32.mrf.mxu1 }
 0xd06   :  { %v2212_v29 = vadd.f32 %v2207_v17, %v3888_v32 }
 0xd07   :  { %v2928_v15 = vpop.f32.mrf.mxu1 }
 0xd08   :  { %2289 = vadd.xlane.f32.xlu0 %v2212_v29 }
 0xd8d   :  { %v2288_v54 = vpop.xlane.xlu1 %2287 }
 0xd8e   :  { %v2291_v12 = vmul.f32 0.00862069, %v2288_v54  ;;  %v4012_v54 = vrot.slane %v3674_v41, %v3562_v48 }
 0xd90   :  { %v2293_v16 = vsub.f32 %v2211_v8, %v2291_v12  ;;  %v4000_v8 = vrot.slane %v3911_v1, %v3562_v48  ;;  %v1084_v1 = vcombine.high %v4004_v9, %v4365_v37  ;;  %v1035_v52 = vcombine.high %v4012_v54, %v4365_v37 }
 0xd91   :  { %v2290_v58 = vpop.xlane.xlu0 %2289 }
 0xd92   :  { %v2292_v14 = vmul.f32 0.00862069, %v2290_v58  ;;  %v3989_v36 = vmul.f32 %v3986_v2, %v2293_v16  ;;  %v1982_v12 = vcombine.high %v4000_v8, %v4365_v37  ;;  %v1933_v16 = vcombine.high %v4008_v7, %v4365_v37 }
 0xd93   :  { %v2993_v41 = vpack.i.bf16 %v1084_v1, %v1035_v52  ;;  %v2682_v52 = vld [vmem:[%s4332_s5] ss:$0 sm:$0xff] }
 0xd94   :  { %v2294_v17 = vsub.f32 %v2212_v29, %v2292_v14  ;;  %v2297_v32 = vmul.f32 %v3989_v36, %v3989_v36  ;;  %v3184_v29 = vld [vmem:[#allocation7 + $0x30] sm:$0xff]   ;;  %v2998_v58 = vpack.i.bf16 %v1982_v12, %v1933_v16  ;;  %v3186_v14 = vld [vmem:[#allocation7 + $0x20] sm:$0xff]   ;;  %v4369_v12 = vpack.i.bf16 %v3928_v39, %v3917_v42 }
 0xd95   :  { %2932 = vmatpush3.bf16.msra.mxu0 %v3184_v29  ;;  %v3188_v29 = vld [vmem:[#allocation7 + $0x10] sm:$0xff]   ;;  %v4374_v42 = vpack.i.bf16 %v3729_v35, %v3706_v25  ;;  %v4377_v25 = vpack.i.bf16 %v3958_v59, %v3935_v13  ;;  %v4080_v35 = vrot.slane %v3796_v61, %v3562_v48  ;;  %v3193_v61 = vld [vmem:[#allocation8 + $0x28] sm:$0xff]  }
 0xd96   :  { %2299 = vadd.xlane.f32.xlu0 %v2297_v32  ;;  %v3994_v15 = vmul.f32 %v3986_v2, %v2294_v17  ;;  %2933 = vmatprep.subr.bf16.mxu0 %v4365_v37  ;;  %v3187_v17 = vld [vmem:[#allocation7 + $0x18] sm:$0xff]   ;;  %v4367_v32 = vpack.i.bf16 %v3699_v20, %v3687_v11  ;;  %v4370_v11 = vpack.i.bf16 %v3702_v21, %v3695_v19  ;;  %v3189_v20 = vld [vmem:[#allocation7 + $0x8] sm:$0xff]   ;;  %v3190_v19 = vld [vmem:[#allocation7] sm:$0xff]  }
 0xd97   :  { %v4373_v21 = vpack.i.bf16 %v3931_v6, %v3923_v18  ;;  %v4072_v18 = vrot.slane %v3802_v24, %v3562_v48  ;;  %v3191_v6 = vld [vmem:[#allocation8 + $0x38] sm:$0xff]   ;;  %v3192_v13 = vld [vmem:[#allocation8 + $0x30] sm:$0xff]  }
 0xd98   :  { %v2298_v0 = vmul.f32 %v3994_v15, %v3994_v15  ;;  %2950 = vmatpush3.bf16.msra.mxu1 %v3191_v6 }
 0xd99   :  { %2934 = vmatpush3.bf16.msra.mxu0 %v3185_v56  ;;  %v1533_v39 = vcombine.high %v4072_v18, %v4365_v37  ;;  %2951 = vmatprep.subr.bf16.mxu1 %v4365_v37 }
 0xd9a   :  { %2301 = vadd.xlane.f32.xlu1 %v2298_v0  ;;  %2935 = vmatprep.subr.bf16.mxu0 %v4365_v37  ;;  %v4368_v0 = vpack.i.bf16 %v3716_v31, %v3712_v27  ;;  %v4371_v27 = vpack.i.bf16 %v3945_v3, %v3941_v10  ;;  %v4372_v31 = vpack.i.bf16 %v3726_v34, %v3722_v33  ;;  %v3194_v10 = vld [vmem:[#allocation8 + $0x20] sm:$0xff]  }
 0xd9b   :  { %v4375_v33 = vpack.i.bf16 %v3955_v23, %v3951_v26  ;;  %v4376_v34 = vpack.i.bf16 %v3743_v44, %v3739_v43  ;;  %v4378_v43 = vpack.i.bf16 %v3972_v30, %v3968_v28  ;;  %v1484_v44 = vcombine.high %v4080_v35, %v4365_v37  ;;  %v3195_v30 = vld [vmem:[#allocation8 + $0x18] sm:$0xff]  }
 0xd9c   :  { %2952 = vmatpush3.bf16.msra.mxu1 %v3192_v13 }
 0xd9d   :  { %2936 = vmatpush3.bf16.msra.mxu0 %v3186_v14  ;;  %v3068_v24 = vpack.i.bf16 %v1533_v39, %v1484_v44  ;;  %2953 = vmatprep.subr.bf16.mxu1 %v4365_v37 }
 0xd9e   :  { %2937 = vmatprep.subr.bf16.mxu0 %v4365_v37 }
 0xda0   :  { %2954 = vmatpush3.bf16.msra.mxu1 %v3193_v61 }
 0xda1   :  { %2938 = vmatpush3.bf16.msra.mxu0 %v3187_v17  ;;  %2955 = vmatprep.subr.bf16.mxu1 %v4365_v37  ;;  %v2683_v17 = vld [vmem:[%s4333_s6] ss:$0 sm:$0xff] }
 0xda2   :  { %2939 = vmatprep.subr.bf16.mxu0 %v4365_v37 }
 0xda4   :  { %2956 = vmatpush3.bf16.msra.mxu1 %v3194_v10 }
 0xda5   :  { %2940 = vmatpush3.bf16.msra.mxu0 %v3188_v29  ;;  %2957 = vmatprep.subr.bf16.mxu1 %v4365_v37 }
 0xda6   :  { %2941 = vmatprep.subr.bf16.mxu0 %v4365_v37 }
 0xda8   :  { %2958 = vmatpush3.bf16.msra.mxu1 %v3195_v30 }
 0xda9   :  { %2942 = vmatpush3.bf16.msra.mxu0 %v3189_v20  ;;  %2959 = vmatprep.subr.bf16.mxu1 %v4365_v37  ;;  %v3198_v20 = vld [vmem:[#allocation8] sm:$0xff]  }
 0xdaa   :  { %2943 = vmatprep.subr.bf16.mxu0 %v4365_v37 }
 0xdab   :  { %2999 = vrot.lane.b32.xlu1 %v2998_v58, %s3362_s25 }
 0xdac   :  { %2994 = vrot.lane.b32.xlu0 %v2993_v41, %s3362_s25 }
 0xdad   :  { %2944 = vmatpush3.bf16.msra.mxu0 %v3190_v19 }
 0xdaf   :  { %3004 = vrot.lane.b32.xlu1 %v4367_v32, %s3363_s26 }
 0xdb0   :  { %3014 = vrot.lane.b32.xlu0 %v4368_v0, %s3364_s27 }
 0xdb3   :  { %3009 = vrot.lane.b32.xlu1 %v4369_v12, %s3363_s26 }
 0xdb4   :  { %3024 = vrot.lane.b32.xlu0 %v4370_v11, %s3361_s4  ;;  %v3196_v11 = vld [vmem:[#allocation8 + $0x10] sm:$0xff]  }
 0xdb5   :  { %2960 = vmatpush3.bf16.msra.mxu1 %v3196_v11 }
 0xdb6   :  { %2961 = vmatprep.subr.bf16.mxu1 %v4365_v37 }
 0xdb7   :  { %3019 = vrot.lane.b32.xlu1 %v4371_v27, %s3364_s27 }
 0xdb8   :  { %3034 = vrot.lane.b32.xlu0 %v4372_v31, %s3365_s28 }
 0xdbb   :  { %3029 = vrot.lane.b32.xlu1 %v4373_v21, %s3361_s4 }
 0xdbc   :  { %3044 = vrot.lane.b32.xlu0 %v4374_v42, %s3366_s29 }
 0xdbf   :  { %3039 = vrot.lane.b32.xlu1 %v4375_v33, %s3365_s28 }
 0xdc0   :  { %3054 = vrot.lane.b32.xlu0 %v4376_v34, %s3367_s3 }
 0xdc3   :  { %3049 = vrot.lane.b32.xlu1 %v4377_v25, %s3366_s29 }
 0xdc7   :  { %3059 = vrot.lane.b32.xlu1 %v4378_v43, %s3367_s3  ;;  %v2693_v43 = vld [vmem:[%s4337_s10] ss:$0 sm:$0xff] }
 0xdcb   :  { %3069 = vrot.lane.b32.xlu1 %v3068_v24, %s3362_s25 }
 0xe1f   :  { %v2300_v28 = vpop.xlane.xlu0 %2299 }
 0xe20   :  { %v2303_v3 = vmul.f32 0.00862069, %v2300_v28 }
 0xe22   :  { %v2305_v26 = vadd.f32 1e-05, %v2303_v3  ;;  %v4114_v3 = vrot.slane %v3566_v51, %v3562_v48  ;;  %v4380_v51 = vpack.i.bf16 %v3838_v47, %v3834_v57  ;;  %v4389_v57 = vld [vmem:[#allocation17_spill] sm:$0xff]  ;;  %v4392_v47 = vld [vmem:[#allocation23_spill] sm:$0xff] }
 0xe23   :  { %v2302_v23 = vpop.xlane.xlu1 %2301 }
 0xe24   :  { %3231 = vrsqrt.f32 %v2305_v26  ;;  %v2304_v59 = vmul.f32 0.00862069, %v2302_v23  ;;  %v4118_v26 = vrot.slane %v3552_v38, %v3562_v48  ;;  %v633_v23 = vcombine.high %v4114_v3, %v4365_v37 }
 0xe25   :  { %v4381_v38 = vpack.i.bf16 %v3585_v62, %v3573_v55  ;;  %v4382_v48 = vpack.i.bf16 %v3824_v49, %v3817_v40  ;;  %v4385_v55 = vpack.i.bf16 %v3588_v63, %v3580_v60  ;;  %v4386_v62 = vld [vmem:[#allocation22_spill] sm:$0xff]  ;;  %v4397_v63 = vld [vmem:[#allocation21_spill] sm:$0xff] }
 0xe26   :  { %v2306_v1 = vadd.f32 1e-05, %v2304_v59  ;;  %v584_v59 = vcombine.high %v4118_v26, %v4365_v37  ;;  %v4387_v40 = vpack.i.bf16 %v3851_v53, %v4386_v62  ;;  %v4388_v49 = vld [vmem:[#allocation18_spill] sm:$0xff] }
 0xe28   :  { %3233 = vrsqrt.f32 %v2306_v1  ;;  %v3063_v1 = vpack.i.bf16 %v633_v23, %v584_v59 }
 0xe31   :  { %v3232_v56 = vpop.eup %3231 }
 0xe32   :  { %v2309_v16 = vmul.f32 %v3232_v56, %v3989_v36  ;;  %v3197_v36 = vld [vmem:[#allocation8 + $0x8] sm:$0xff]   ;;  %v4379_v56 = vpack.i.bf16 %v3821_v45, %v3809_v46  ;;  %v4383_v46 = vpack.i.bf16 %v3602_v5, %v3598_v4  ;;  %v4384_v45 = vpack.i.bf16 %v3848_v22, %v3844_v50  ;;  %v4391_v5 = vld [vmem:[#allocation24_spill] sm:$0xff]  ;;  %v4394_v22 = vld [vmem:[#allocation19_spill] sm:$0xff] }
 0xe33   :  { %2962 = vmatpush3.bf16.msra.mxu1 %v3197_v36  ;;  %v4390_v4 = vpack.i.bf16 %v4388_v49, %v4389_v57  ;;  %v4393_v50 = vpack.i.bf16 %v4391_v5, %v4392_v47 }
 0xe34   :  { %v2317_v14 = vmul.f32 %v2682_v52, %v2309_v16  ;;  %2963 = vmatprep.subr.bf16.mxu1 %v4365_v37  ;;  %v4395_v37 = vld [vmem:[#allocation16_spill] sm:$0xff] }
 0xe35   :  { %v3234_v58 = vpop.eup %3233  ;;  %v4396_v60 = vpack.i.bf16 %v4394_v22, %v4395_v37  ;;  %v4398_v16 = vld [vmem:[#allocation20_spill] sm:$0xff] }
 0xe36   :  { %v2310_v41 = vmul.f32 %v3234_v58, %v3994_v15  ;;  %v2325_v0 = vadd.f32 %v2683_v17, %v2317_v14  ;;  %v2684_v15 = vld [vmem:[%s4335_s8] ss:$0 sm:$0xff]  ;;  %v4399_v53 = vpack.i.bf16 %v4397_v63, %v4398_v16  ;;  %v2995_v14 = vpop.permute.xlu0 %2994 }
 0xe37   :  { %2964 = vmatpush3.bf16.msra.mxu1 %v3198_v20 }
 0xe38   :  { %v2318_v32 = vmul.f32 %v2682_v52, %v2310_v41  ;;  %v3000_v52 = vpop.permute.xlu1 %2999 }
 0xe3a   :  { %v2326_v29 = vadd.f32 %v2683_v17, %v2318_v32  ;;  %v3015_v32 = vpop.permute.xlu0 %3014 }
 0xe3c   :  { %v2327_v12 = vpack.c.bf16 %v2326_v29, %v2325_v0  ;;  %v3005_v58 = vpop.permute.xlu1 %3004 }
 0xe3e   :  { %2946 = vmatmul.mubr.bf16.vlgmr.msra.gmra.mxu0 %v2327_v12 }
 0xe40   :  { %v3010_v41 = vpop.permute.xlu1 %3009 }
 0xe44   :  { %v4173_v17 = vpop.permute.xlu1 %3019 }
 0xe45   :  { %v3022_v57 = vunpack.i.h.bf16 %v4173_v17 }
 0xefe   :  { %v2432_v27 = vpop.f32.mrf.mxu0 }
 0xeff   :  { %v2433_v19 = vadd.f32 %v2684_v15, %v2432_v27 }
 0xf00   :  { %v2947_v31 = vpop.f32.mrf.mxu0 }
 0xf01   :  { %v2439_v34 = vmax.f32 %v2433_v19, 0.0 }
 0xf02   :  { %v2435_v21 = vpop.f32.mrf.mxu0 }
 0xf03   :  { %v2436_v42 = vadd.f32 %v2684_v15, %v2435_v21 }
 0xf04   :  { %v2948_v33 = vpop.f32.mrf.mxu0 }
 0xf05   :  { %v2440_v25 = vmax.f32 %v2436_v42, 0.0 }
 0xf07   :  { %v2441_v39 = vpack.c.bf16 %v2440_v25, %v2439_v34 }
 0xf09   :  { %2966 = vmatmul.mubr.bf16.vlgmr.msra.gmra.mxu1 %v2441_v39  ;;  %v2997_v39 = vunpack.i.h.bf16 %v2995_v14 }
 0xfc9   :  { %v2546_v44 = vpop.f32.mrf.mxu1 }
 0xfca   :  { %v2547_v24 = vadd.f32 %v2693_v43, %v2546_v44 }
 0xfcb   :  { %v2967_v6 = vpop.f32.mrf.mxu1 }
 0xfcc   :  { %v2553_v13 = vadd.f32 %v2547_v24, %v2325_v0  ;;  %v4175_v0 = vpop.permute.xlu1 %3029  ;;  %v3007_v6 = vunpack.i.h.bf16 %v3005_v58 }
 0xfcd   :  { %v2549_v61 = vpop.f32.mrf.mxu1 }
 0xfce   :  { %v2550_v10 = vadd.f32 %v2693_v43, %v2549_v61  ;;  %2555 = vadd.xlane.f32.xlu0 %v2553_v13  ;;  %v2996_v43 = vunpack.i.l.bf16 %v2995_v14  ;;  %v3006_v61 = vunpack.i.l.bf16 %v3005_v58 }
 0xfcf   :  { %v2968_v30 = vpop.f32.mrf.mxu1 }
 0xfd0   :  { %v2554_v28 = vadd.f32 %v2550_v10, %v2326_v29  ;;  %v3025_v29 = vpop.permute.xlu0 %3024  ;;  %v4177_v12 = vpop.permute.xlu1 %3039  ;;  %v1144_v30 = vsel %vm516_vm3, %v4012_v54, %v2996_v43  ;;  %v3012_v54 = vunpack.i.h.bf16 %v3010_v41 }
 0xfd1   :  { %v1146_v23 = vsel %vm695_vm5, %v1144_v30, %v3006_v61  ;;  %v3042_v37 = vunpack.i.h.bf16 %v4177_v12 }
 0xfd2   :  { %2557 = vadd.xlane.f32.xlu1 %v2554_v28 }
 0xfd4   :  { %v4179_v11 = vpop.permute.xlu0 %3034  ;;  %v4181_v36 = vpop.permute.xlu1 %3049 }
 0xfd5   :  { %v3037_v5 = vunpack.i.h.bf16 %v4179_v11  ;;  %v3036_v47 = vunpack.i.l.bf16 %v4179_v11 }
 0xfd8   :  { %v4183_v20 = vpop.permute.xlu0 %3044  ;;  %v4185_v15 = vpop.permute.xlu1 %3059 }
 0xfd9   :  { %v3047_v63 = vunpack.i.h.bf16 %v4183_v20  ;;  %v3046_v16 = vunpack.i.l.bf16 %v4183_v20  ;;  %v3062_v14 = vunpack.i.h.bf16 %v4185_v15 }
 0xfdc   :  { %v4187_v27 = vpop.permute.xlu0 %3054  ;;  %v4189_v31 = vpop.permute.xlu1 %3069 }
 0xfe3   :  { %3079 = vrot.lane.b32.xlu1 %v4379_v56, %s3363_s26  ;;  %v3001_v56 = vunpack.i.l.bf16 %v3000_v52 }
 0xfe4   :  { %3064 = vrot.lane.b32.xlu0 %v3063_v1, %s3362_s25  ;;  %v3002_v1 = vunpack.i.h.bf16 %v3000_v52  ;;  %v3051_v52 = vunpack.i.l.bf16 %v4181_v36 }
 0xfe5   :  { %v2042_v62 = vsel %vm516_vm3, %v4008_v7, %v3001_v56 }
 0xfe7   :  { %3089 = vrot.lane.b32.xlu1 %v4380_v51, %s3364_s27  ;;  %v3017_v51 = vunpack.i.h.bf16 %v3015_v32 }
 0xfe8   :  { %3074 = vrot.lane.b32.xlu0 %v4381_v38, %s3363_s26  ;;  %v3016_v38 = vunpack.i.l.bf16 %v3015_v32 }
 0xfeb   :  { %3099 = vrot.lane.b32.xlu1 %v4382_v48, %s3361_s4  ;;  %v3027_v48 = vunpack.i.h.bf16 %v3025_v29 }
 0xfec   :  { %3084 = vrot.lane.b32.xlu0 %v4383_v46, %s3364_s27  ;;  %v3026_v46 = vunpack.i.l.bf16 %v3025_v29  ;;  %v3057_v29 = vunpack.i.h.bf16 %v4187_v27 }
 0xfef   :  { %3109 = vrot.lane.b32.xlu1 %v4384_v45, %s3365_s28  ;;  %v3011_v45 = vunpack.i.l.bf16 %v3010_v41 }
 0xff0   :  { %3094 = vrot.lane.b32.xlu0 %v4385_v55, %s3361_s4  ;;  %v2043_v55 = vsel %vm516_vm3, %v4000_v8, %v3002_v1  ;;  %v3031_v8 = vunpack.i.l.bf16 %v4175_v0 }
 0xff1   :  { %v2044_v7 = vsel %vm695_vm5, %v2042_v62, %v3011_v45  ;;  %v2045_v22 = vsel %vm695_vm5, %v2043_v55, %v3012_v54 }
 0xff2   :  { %v2047_v41 = vsel %vm698_vm6, %v2045_v22, %v3022_v57 }
 0xff3   :  { %3119 = vrot.lane.b32.xlu1 %v4387_v40, %s3366_s29 }
 0xff4   :  { %3104 = vrot.lane.b32.xlu0 %v4390_v4, %s3365_s28  ;;  %v3021_v4 = vunpack.i.l.bf16 %v4173_v17  ;;  %v3061_v17 = vunpack.i.l.bf16 %v4185_v15 }
 0xff6   :  { %v2046_v58 = vsel %vm698_vm6, %v2044_v7, %v3021_v4 }
 0xff7   :  { %3129 = vrot.lane.b32.xlu1 %v4393_v50, %s3367_s3  ;;  %v3032_v50 = vunpack.i.h.bf16 %v4175_v0  ;;  %v2048_v32 = vsel %vm421_vm1, %v2046_v58, %v3031_v8 }
 0xff8   :  { %3114 = vrot.lane.b32.xlu0 %v4396_v60, %s3366_s29  ;;  %v3041_v60 = vunpack.i.l.bf16 %v4177_v12  ;;  %v3056_v12 = vunpack.i.l.bf16 %v4187_v27 }
 0xff9   :  { %v2049_v0 = vsel %vm421_vm1, %v2047_v41, %v3032_v50 }
 0xffa   :  { %v2050_v11 = vsel %vm703_vm7, %v2048_v32, %v3041_v60 }
 0xffc   :  { %3124 = vrot.lane.b32.xlu0 %v4399_v53, %s3367_s3  ;;  %v3052_v53 = vunpack.i.h.bf16 %v4181_v36  ;;  %v2051_v36 = vsel %vm703_vm7, %v2049_v0, %v3042_v37 }
 0xffe   :  { %v2053_v15 = vsel %vm706_vm8, %v2051_v36, %v3052_v53 }
0x1057   :  { %v2556_v19 = vpop.xlane.xlu0 %2555 }
0x1058   :  { %v2559_v21 = vmul.f32 0.00862069, %v2556_v19 }
0x105a   :  { %v2561_v42 = vsub.f32 %v2553_v13, %v2559_v21  ;;  %v1145_v13 = vsel %vm516_vm3, %v4004_v9, %v2997_v39  ;;  %v2052_v21 = vsel %vm706_vm8, %v2050_v11, %v3051_v52 }
0x105b   :  { %v2558_v33 = vpop.xlane.xlu1 %2557 }
0x105c   :  { %v2560_v34 = vmul.f32 0.00862069, %v2558_v33  ;;  %v4192_v25 = vmul.f32 %v3986_v2, %v2561_v42  ;;  %v2054_v42 = vsel %vm709_vm9, %v2052_v21, %v3061_v17  ;;  %v2055_v33 = vsel %vm709_vm9, %v2053_v15, %v3062_v14 }
0x105e   :  { %v2562_v44 = vsub.f32 %v2554_v28, %v2560_v34  ;;  %v2565_v24 = vmul.f32 %v4192_v25, %v4192_v25  ;;  %v1147_v28 = vsel %vm695_vm5, %v1145_v13, %v3007_v6  ;;  %v3065_v6 = vpop.permute.xlu0 %3064 }
0x105f   :  { %v1149_v9 = vsel %vm698_vm6, %v1147_v28, %v3017_v51  ;;  %v3080_v13 = vpop.permute.xlu1 %3079 }
0x1060   :  { %2567 = vadd.xlane.f32.xlu0 %v2565_v24  ;;  %v4197_v10 = vmul.f32 %v3986_v2, %v2562_v44  ;;  %v1148_v2 = vsel %vm698_vm6, %v1146_v23, %v3016_v38  ;;  %v1151_v49 = vsel %vm421_vm1, %v1149_v9, %v3027_v48  ;;  %v3138_v44 = vpack.i.bf16 %v2055_v33, %v2054_v42 }
0x1061   :  { %v1150_v40 = vsel %vm421_vm1, %v1148_v2, %v3026_v46  ;;  %v1153_v19 = vsel %vm703_vm7, %v1151_v49, %v3037_v5  ;;  %v3072_v38 = vunpack.i.h.bf16 %v4189_v31  ;;  %v3071_v2 = vunpack.i.l.bf16 %v4189_v31 }
0x1062   :  { %v2566_v59 = vmul.f32 %v4197_v10, %v4197_v10  ;;  %v1152_v20 = vsel %vm703_vm7, %v1150_v40, %v3036_v47  ;;  %v1155_v27 = vsel %vm706_vm8, %v1153_v19, %v3047_v63  ;;  %v3075_v61 = vpop.permute.xlu0 %3074  ;;  %v3067_v9 = vunpack.i.h.bf16 %v3065_v6 }
0x1063   :  { %v1154_v34 = vsel %vm706_vm8, %v1152_v20, %v3046_v16  ;;  %v1157_v43 = vsel %vm709_vm9, %v1155_v27, %v3057_v29  ;;  %v3090_v23 = vpop.permute.xlu1 %3089  ;;  %v3066_v48 = vunpack.i.l.bf16 %v3065_v6  ;;  %v3077_v46 = vunpack.i.h.bf16 %v3075_v61 }
0x1064   :  { %2569 = vadd.xlane.f32.xlu1 %v2566_v59  ;;  %v1156_v39 = vsel %vm709_vm9, %v1154_v34, %v3056_v12  ;;  %v3076_v54 = vunpack.i.l.bf16 %v3075_v61  ;;  %v3082_v45 = vunpack.i.h.bf16 %v3080_v13  ;;  %v3081_v55 = vunpack.i.l.bf16 %v3080_v13 }
0x1065   :  { %v3133_v24 = vpack.i.bf16 %v1157_v43, %v1156_v39  ;;  %v3091_v49 = vunpack.i.l.bf16 %v3090_v23  ;;  %v1594_v4 = vsel %vm516_vm3, %v4072_v18, %v3072_v38  ;;  %v1593_v5 = vsel %vm516_vm3, %v4080_v35, %v3071_v2 }
0x1066   :  { %v3085_v30 = vpop.permute.xlu0 %3084  ;;  %v694_v47 = vsel %vm516_vm3, %v4114_v3, %v3067_v9  ;;  %v693_v31 = vsel %vm516_vm3, %v4118_v26, %v3066_v48  ;;  %v1596_v22 = vsel %vm695_vm5, %v1594_v4, %v3082_v45  ;;  %v3092_v37 = vunpack.i.h.bf16 %v3090_v23  ;;  %v4400_v4 = vld [vmem:[#allocation15_spill] sm:$0xff] }
0x1067   :  { %v3100_v59 = vpop.permute.xlu1 %3099  ;;  %v3086_v62 = vunpack.i.l.bf16 %v3085_v30  ;;  %v3087_v40 = vunpack.i.h.bf16 %v3085_v30  ;;  %v696_v8 = vsel %vm695_vm5, %v693_v31, %v3076_v54  ;;  %v697_v7 = vsel %vm695_vm5, %v694_v47, %v3077_v46 }
0x1068   :  { %v1595_v18 = vsel %vm695_vm5, %v1593_v5, %v3081_v55  ;;  %v3102_v26 = vunpack.i.h.bf16 %v3100_v59  ;;  %v3101_v53 = vunpack.i.l.bf16 %v3100_v59  ;;  %v1598_v17 = vsel %vm698_vm6, %v1596_v22, %v3092_v37 }
0x1069   :  { %v699_v60 = vsel %vm698_vm6, %v696_v8, %v3086_v62  ;;  %v700_v3 = vsel %vm698_vm6, %v697_v7, %v3087_v40  ;;  %v1597_v16 = vsel %vm698_vm6, %v1595_v18, %v3091_v49  ;;  %v3368_v33 = vmov 1966171168  }
0x106a   :  { %v3095_v28 = vpop.permute.xlu0 %3094  ;;  %v1599_v21 = vsel %vm421_vm1, %v1597_v16, %v3101_v53  ;;  %v1600_v15 = vsel %vm421_vm1, %v1598_v17, %v3102_v26  ;;  %v2244_v34 = vunpack.c.l.s4 %v3368_v33  ;;  %v2702_v53 = vld [vmem:[%s4338_s11] ss:$0 sm:$0xff]  ;;  %s3369_s11 = smov [#allocation10]  }
0x106b   :  { %v3110_v56 = vpop.permute.xlu1 %3109  ;;  %v3097_v35 = vunpack.i.h.bf16 %v3095_v28  ;;  %v3096_v63 = vunpack.i.l.bf16 %v3095_v28  ;;  %s2602_s4 = sshll.u32 %s3369_s11, 4  ;;  %s2603_s4 = int_to_ptr.vmem [resolvable:$true] %s2602_s4 }
0x106c   :  { %v3111_v41 = vunpack.i.l.bf16 %v3110_v56  ;;  %v3112_v32 = vunpack.i.h.bf16 %v3110_v56  ;;  %v2245_v38 = vunpack.c.0.s8 %v2244_v34  ;;  %s3319_s26 = scalar_lea.vmem %s2603_s4, 256  ;;  %p3324_p7 = scmp.lt.s32.totalorder %s2603_s4, %s2603_s4 }
0x106d   :  { %v701_v11 = vsel %vm421_vm1, %v699_v60, %v3096_v63  ;;  %v702_v36 = vsel %vm421_vm1, %v700_v3, %v3097_v35  ;;  %vm2280_vm1 = vmor %vm2279_vm0, %vm4293_vm15  ;;  %v2281_v35 = vld [vmem:[%s4341_s14] sm:$0x3]  ;;  %v2284_v63 = vld [vmem:[%s4341_s14 + $0x2] sm:$0x3]  ;;  %p3320_p6 = scmp.ne.s32.totalorder %s2603_s4, %s3319_s26  ;;  %p3325_p8 = scmp.lt.s32.totalorder %s3319_s26, %s3319_s26 }
0x106e   :  { %v3105_v1 = vpop.permute.xlu0 %3104  ;;  %v1601_v43 = vsel %vm703_vm7, %v1599_v21, %v3111_v41  ;;  %v2248_v5 = vsub.s32 %v2245_v38, %v4400_v4 }
0x106f   :  { %v3120_v57 = vpop.permute.xlu1 %3119  ;;  %v3107_v52 = vunpack.i.h.bf16 %v3105_v1  ;;  %v3106_v58 = vunpack.i.l.bf16 %v3105_v1  ;;  %p3326_p9 = por %p3325_p8, %p3324_p7 }
0x1070   :  { %v3121_v19 = vunpack.i.l.bf16 %v3120_v57 }
0x1071   :  { %v704_v27 = vsel %vm703_vm7, %v701_v11, %v3106_v58  ;;  %v705_v39 = vsel %vm703_vm7, %v702_v36, %v3107_v52  ;;  %p3327_p10 = pnand %p3326_p9, %p3320_p6 }
0x1072   :  { %v3115_v51 = vpop.permute.xlu0 %3114  ;;  %v1603_v23 = vsel %vm706_vm8, %v1601_v43, %v3121_v19 }
0x1073   :  { %v3116_v0 = vunpack.i.l.bf16 %v3115_v51  ;;  %v3130_v29 = vpop.permute.xlu1 %3129  ;;  %v3117_v20 = vunpack.i.h.bf16 %v3115_v51 }
0x1074   :  { %v3132_v56 = vunpack.i.h.bf16 %v3130_v29  ;;  %v3131_v51 = vunpack.i.l.bf16 %v3130_v29 }
0x1075   :  { %3139 = vrot.lane.b32.xlu1 %v3138_v44, %s3348_s16  ;;  %v3122_v44 = vunpack.i.h.bf16 %v3120_v57  ;;  %v707_v6 = vsel %vm706_vm8, %v704_v27, %v3116_v0  ;;  %v708_v30 = vsel %vm706_vm8, %v705_v39, %v3117_v20 }
0x1076   :  { %3134 = vrot.lane.b32.xlu0 %v3133_v24, %s3348_s16  ;;  %v4261_v50 = vpop.permute.xlu0 %3124  ;;  %v1602_v24 = vsel %vm703_vm7, %v1600_v15, %v3112_v32  ;;  %v1605_v49 = vsel %vm709_vm9, %v1603_v23, %v3131_v51 }
0x1077   :  { %v3126_v28 = vunpack.i.l.bf16 %v4261_v50  ;;  %v3127_v1 = vunpack.i.h.bf16 %v4261_v50  ;;  %v1604_v2 = vsel %vm706_vm8, %v1602_v24, %v3122_v44 }
0x1078   :  { %v1606_v57 = vsel %vm709_vm9, %v1604_v2, %v3132_v56 }
0x1079   :  { %v710_v45 = vsel %vm709_vm9, %v707_v6, %v3126_v28  ;;  %v711_v40 = vsel %vm709_vm9, %v708_v30, %v3127_v1 }
0x10e9   :  { %v2568_v14 = vpop.xlane.xlu0 %2567 }
0x10ea   :  { %v2571_v12 = vmul.f32 0.00862069, %v2568_v14  ;;  %v2703_v14 = vld [vmem:[%s4339_s12] ss:$0 sm:$0xff] }
0x10ec   :  { %v2573_v42 = vadd.f32 1e-05, %v2571_v12 }
0x10ed   :  { %v3135_v61 = vpop.permute.xlu0 %3134  ;;  %v2570_v13 = vpop.xlane.xlu1 %2569 }
0x10ee   :  { %3235 = vrsqrt.f32 %v2573_v42  ;;  %v2572_v59 = vmul.f32 0.00862069, %v2570_v13  ;;  %v3137_v9 = vunpack.i.h.bf16 %v3135_v61  ;;  %v3136_v48 = vunpack.i.l.bf16 %v3135_v61 }
0x10f0   :  { %v2574_v46 = vadd.f32 1e-05, %v2572_v59  ;;  %v2230_v47 = vsel %vm2229_vm10, %v710_v45, %v3136_v48  ;;  %v2231_v31 = vsel %vm2229_vm10, %v711_v40, %v3137_v9 }
0x10f1   :  { %v3140_v54 = vpop.permute.xlu1 %3139 }
0x10f2   :  { %3237 = vrsqrt.f32 %v2574_v46  ;;  %v3142_v55 = vunpack.i.h.bf16 %v3140_v54  ;;  %v3141_v62 = vunpack.i.l.bf16 %v3140_v54 }
0x10f4   :  { %v2232_v8 = vsel %vm2229_vm10, %v1605_v49, %v3141_v62  ;;  %v2233_v7 = vsel %vm2229_vm10, %v1606_v57, %v3142_v55 }
0x10f5   :  { %v2680_v22 = vpack.c.bf16 %v2232_v8, %v2230_v47  ;;  %v2681_v37 = vpack.c.bf16 %v2233_v7, %v2231_v31 }
0x10f7   :  { %v2249_v18 = vrot.slane %v2680_v22, %v2248_v5  ;;  %v2264_v60 = vrot.slane %v2681_v37, %v2248_v5 }
0x10f9   :  { %v2256_v3 = vrot.slane %v2249_v18, %v2248_v5  ;;  %v2271_v16 = vrot.slane %v2264_v60, %v2248_v5 }
0x10fb   :  { %v3236_v26 = vpop.eup %3235  ;;  %v2282_v52 = vsel %vm2280_vm1, %v2256_v3, %v2281_v35  ;;  %v2285_v58 = vsel %vm2280_vm1, %v2271_v16, %v2284_v63 }
0x10fc   :  { %v2577_v41 = vmul.f32 %v3236_v26, %v4192_v25  ;;  %2283 = vst [vmem:[%s4341_s14] sm:$0x3] %v2282_v52  ;;  %2286 = vst [vmem:[%s4341_s14 + $0x2] sm:$0x3] %v2285_v58 }
0x10fe   :  { %v2585_v17 = vmul.f32 %v2702_v53, %v2577_v41 }
0x10ff   :  { %v3238_v32 = vpop.eup %3237 }
0x1100   :  { %v2593_v0 = vadd.f32 %v2703_v14, %v2585_v17  ;;  %v2578_v29 = vmul.f32 %v3238_v32, %v4197_v10 }
0x1102   :  { %2595 = vst [vmem:[#allocation10] sm:$0xff] %v2593_v0  ;;  %v2586_v25 = vmul.f32 %v2702_v53, %v2578_v29 }
0x1104   :  { %v2594_v12 = vadd.f32 %v2703_v14, %v2586_v25 }
0x1106   :  { %2596 = vst [vmem:[#allocation10 + $0x8] sm:$0xff] %v2594_v12 }
0x1107   :  { %3330 = shalt.err (!%p3327_p10)
}
0x1108   :  { %s3370_s12 = smov 128  }
0x1109   :  { %2608 = dma.vmem_to_hbm [thread:$0]  %s2603_s4, 256, %s4340_s13, [#allocation4], %s3370_s12, %s3370_s12, %s3362_s25  }
0x110a   :  { %3345 = dma.done.wait [#allocation4], 256  }
0x110b   :  { %3346 = vsyncadd [#allocation4], 4294967040 }
0x110c   :  { %2616 = vsyncpa [#allocation3], 1 }
0x110d   :  { %2617 = vsyncpa [#allocation6], 1 }
0x110e   :  { %2618 = vsyncpa [#allocation9], 1 }
0x110f   :  { %2619 = vsyncpa [#allocation4], 1 }

</bundles_post_ra>
